<compile_context>
chip_gen: v7x
topology: tpu7x:2x2x1
jax: 0.10.0
libtpu: 0.0.40
codegen_flags: <defaults>
</compile_context>

<pallas_src>
import jax
import jax.numpy as jnp
from jax import lax
from jax.experimental import pallas as pl
from jax.experimental.pallas import tpu as pltpu

LANE = 128        # TPU lane width; tiny class dim is padded lane-dense to this
SUBLANE = 8       # f32 sublane count; batch is padded up to a multiple of this
NEG_BIG = -1e30   # bias for padded class columns -> softmax prob exactly 0


def make_lstm_kernel(num_layers, seq_len, b_pad, hidden):
    """LSTM recurrence + final Linear + softmax, all in one kernel invocation."""
    H = hidden
    H4 = 4 * H

    def kernel(*refs):
        emb_ref = refs[0]                                    # (T*B_pad, E)
        wx_refs = refs[1:1 + num_layers]                     # (in_l, 4H) each
        wh_refs = refs[1 + num_layers:1 + 2 * num_layers]    # (H, 4H) each
        b_refs = refs[1 + 2 * num_layers:1 + 3 * num_layers]  # (1, 4H) each
        lin_w_ref = refs[1 + 3 * num_layers]                 # (H, C_pad)
        lin_b_ref = refs[2 + 3 * num_layers]                 # (1, C_pad)
        out_ref = refs[3 + 3 * num_layers]                   # (B_pad, C_pad)
        gx_ref = refs[4 + 3 * num_layers]                    # (T*B_pad, 4H) scratch
        hseq_ref = refs[5 + 3 * num_layers]                  # (T*B_pad, H)  scratch

        h_last = jnp.zeros((b_pad, H), jnp.float32)

        for l in range(num_layers):
            # ---- hoisted input-to-hidden projection for ALL timesteps ------
            # One lane-dense batched matmul per layer; bias folded in here so
            # it is amortized over T instead of re-added every step.
            x_all = emb_ref[...] if l == 0 else hseq_ref[...]
            gx_ref[...] = (
                jnp.dot(x_all, wx_refs[l][...],
                        preferred_element_type=jnp.float32)
                + b_refs[l][...]
            )

            wh = wh_refs[l][...]          # load hidden weights once per layer
            last_layer = (l == num_layers - 1)

            # ---- recurrence: only h @ W_hh + elementwise on the crit path --
            def step(t, carry, wh=wh, last_layer=last_layer):
                h, c = carry
                row = t * b_pad
                if not isinstance(row, int):
                    row = pl.multiple_of(row, b_pad)   # sublane-aligned hint
                pre = gx_ref[pl.ds(row, b_pad), :] + jnp.dot(
                    h, wh, preferred_element_type=jnp.float32)   # (B_pad, 4H)
                # fused activations: 1 sigmoid over the full 4H vreg, 1 tanh
                # on the 32-lane `g` region, 1 tanh for the new cell.
                sig = jax.nn.sigmoid(pre)
                i_g = sig[:, 0:H]
                f_g = sig[:, H:2 * H]
                o_g = sig[:, 3 * H:4 * H]
                g_g = jnp.tanh(pre[:, 2 * H:3 * H])
                c_new = f_g * c + i_g * g_g
                h_new = o_g * jnp.tanh(c_new)
                if not last_layer:
                    # hidden sequence feeds the NEXT layer's batched projection
                    hseq_ref[pl.ds(row, b_pad), :] = h_new
                return h_new, c_new

            zeros = jnp.zeros((b_pad, H), jnp.float32)
            h_last, _ = lax.fori_loop(0, seq_len, step, (zeros, zeros),
                                      unroll=True)

        # ---- final Linear + softmax on last layer's last hidden state -------
        logits = (
            jnp.dot(h_last, lin_w_ref[...], preferred_element_type=jnp.float32)
            + lin_b_ref[...]
        )                                                    # (B_pad, C_pad)
        m = jnp.max(logits, axis=-1, keepdims=True)
        e = jnp.exp(logits - m)
        denom = jnp.sum(e, axis=-1, keepdims=True)
        out_ref[...] = e * pl.reciprocal(denom, approx=True)

    return kernel


def prepare_params(params, *, num_layers, emb_dim, hidden_dim, num_class):
    """One-time repacking of PyTorch-layout parameters into kernel layout."""
    H = hidden_dim
    prep = {"emb": params["emb"].astype(jnp.float32)}
    for l in range(num_layers):
        # PyTorch: w_ih (4H, in), w_hh (4H, H), rows grouped i,f,g,o.
        prep[f"wx_{l}"] = params[f"w_ih_{l}"].T.astype(jnp.float32)   # (in, 4H)
        prep[f"wh_{l}"] = params[f"w_hh_{l}"].T.astype(jnp.float32)   # (H, 4H)
        prep[f"b_{l}"] = (
            params[f"b_ih_{l}"] + params[f"b_hh_{l}"]
        ).astype(jnp.float32).reshape(1, 4 * H)

    C = num_class
    c_pad = max(LANE, ((C + LANE - 1) // LANE) * LANE)
    lin_w = params["lin_w"].T.astype(jnp.float32)                     # (H, C)
    prep["lin_w"] = jnp.zeros((H, c_pad), jnp.float32).at[:, :C].set(lin_w)
    prep["lin_b"] = jnp.full((1, c_pad), NEG_BIG, jnp.float32).at[0, :C].set(
        params["lin_b"].astype(jnp.float32))
    return prep


def discriminator_forward(x_ids, prep, *, num_layers, hidden_dim, num_class):
    """x_ids: (B, T) int32 token ids -> softmax probs (B, num_class)."""
    # Embedding lookup (row gather) stays in plain-JAX glue.
    emb = jnp.take(prep["emb"], x_ids, axis=0)               # (B, T, E)
    B, T, E = emb.shape
    emb_t = jnp.transpose(emb, (1, 0, 2))                    # (T, B, E) time-major
    B_pad = max(SUBLANE, ((B + SUBLANE - 1) // SUBLANE) * SUBLANE)
    if B_pad != B:
        emb_t = jnp.pad(emb_t, ((0, 0), (0, B_pad - B), (0, 0)))
    emb2 = emb_t.reshape(T * B_pad, E)                       # 2D, sublane-tiled

    C_pad = prep["lin_w"].shape[1]
    H = hidden_dim
    inputs = [emb2]
    inputs += [prep[f"wx_{l}"] for l in range(num_layers)]
    inputs += [prep[f"wh_{l}"] for l in range(num_layers)]
    inputs += [prep[f"b_{l}"] for l in range(num_layers)]
    inputs += [prep["lin_w"], prep["lin_b"]]

    out = pl.pallas_call(
        make_lstm_kernel(num_layers, T, B_pad, H),
        out_shape=jax.ShapeDtypeStruct((B_pad, C_pad), jnp.float32),
        in_specs=[pl.BlockSpec(memory_space=pltpu.MemorySpace.VMEM)
                  for _ in inputs],
        out_specs=pl.BlockSpec(memory_space=pltpu.MemorySpace.VMEM),
        scratch_shapes=[
            pltpu.VMEM((T * B_pad, 4 * H), jnp.float32),   # hoisted gate pre-acts
            pltpu.VMEM((T * B_pad, H), jnp.float32),       # layer-to-layer h seq
        ],
    )(*inputs)
    return out[:B, :num_class]


def reference_forward(x_ids, params, *, num_layers, hidden_dim, num_class):
    """Pure-JAX reference matching PyTorch nn.LSTM semantics (gate order i,f,g,o)."""
    H = hidden_dim
    emb = jnp.take(params["emb"], x_ids, axis=0)             # (B, T, E)
    B, T, _ = emb.shape
    h = [jnp.zeros((B, H), jnp.float32) for _ in range(num_layers)]
    c = [jnp.zeros((B, H), jnp.float32) for _ in range(num_layers)]
    for t in range(T):
        x = emb[:, t, :]
        for l in range(num_layers):
            wih = params[f"w_ih_{l}"]                        # (4H, in_dim)
            whh = params[f"w_hh_{l}"]                        # (4H, H)
            b = params[f"b_ih_{l}"] + params[f"b_hh_{l}"]
            gates = x @ wih.T + h[l] @ whh.T + b
            i_g = jax.nn.sigmoid(gates[:, 0 * H:1 * H])
            f_g = jax.nn.sigmoid(gates[:, 1 * H:2 * H])
            g_g = jnp.tanh(gates[:, 2 * H:3 * H])
            o_g = jax.nn.sigmoid(gates[:, 3 * H:4 * H])
            c[l] = f_g * c[l] + i_g * g_g
            h[l] = o_g * jnp.tanh(c[l])
            x = h[l]
    logits = x @ params["lin_w"].T + params["lin_b"]
    return jax.nn.softmax(logits, axis=1)


def init_params(key, *, num_class, vocab_size, emb_dim, hidden_dim, num_layers):
    """Mirrors Discriminator.init_params(): every parameter ~ U(-0.05, 0.05)."""
    def u(k, shape):
        return jax.random.uniform(k, shape, jnp.float32, -0.05, 0.05)

    params = {}
    keys = jax.random.split(key, 3 + 4 * num_layers)
    ki = iter(keys)
    params["emb"] = u(next(ki), (vocab_size, emb_dim))
    for l in range(num_layers):
        in_dim = emb_dim if l == 0 else hidden_dim
        params[f"w_ih_{l}"] = u(next(ki), (4 * hidden_dim, in_dim))
        params[f"w_hh_{l}"] = u(next(ki), (4 * hidden_dim, hidden_dim))
        params[f"b_ih_{l}"] = u(next(ki), (4 * hidden_dim,))
        params[f"b_hh_{l}"] = u(next(ki), (4 * hidden_dim,))
    params["lin_w"] = u(next(ki), (num_class, hidden_dim))
    params["lin_b"] = u(next(ki), (num_class,))
    return params


if __name__ == "__main__":
    # Small config consistent with the module's forward.
    num_class = 2
    vocab_size = 20
    emb_dim = 16
    hidden_dim = 32
    num_layers = 2
    batch = 4
    seq_len = 8

    key = jax.random.PRNGKey(0)
    k_param, k_data = jax.random.split(key)
    params = init_params(
        k_param,
        num_class=num_class,
        vocab_size=vocab_size,
        emb_dim=emb_dim,
        hidden_dim=hidden_dim,
        num_layers=num_layers,
    )
    x_ids = jax.random.randint(k_data, (batch, seq_len), 0, vocab_size, jnp.int32)

    # One-time parameter preparation (transposes / padding), off the hot path.
    prep = prepare_params(
        params,
        num_layers=num_layers, emb_dim=emb_dim,
        hidden_dim=hidden_dim, num_class=num_class,
    )

    pred = discriminator_forward(
        x_ids, prep,
        num_layers=num_layers, hidden_dim=hidden_dim, num_class=num_class,
    )
    pred = jax.block_until_ready(pred)

    ref = reference_forward(
        x_ids, params,
        num_layers=num_layers, hidden_dim=hidden_dim, num_class=num_class,
    )
    assert pred.shape == (batch, num_class)
    # approx=True reciprocal in the softmax -> compare with a slightly looser tol.
    assert jnp.allclose(pred, ref, rtol=5e-3, atol=1e-3), (pred, ref)
    print("KERNEL_OK")
</pallas_src>

<mosaic_0001>
module attributes {stable_mosaic.version = 11 : i64} {
  func.func @kernel(%arg0: memref<64x16xf32, #tpu.memory_space<vmem>>, %arg1: memref<16x128xf32, #tpu.memory_space<vmem>>, %arg2: memref<32x128xf32, #tpu.memory_space<vmem>>, %arg3: memref<32x128xf32, #tpu.memory_space<vmem>>, %arg4: memref<32x128xf32, #tpu.memory_space<vmem>>, %arg5: memref<1x128xf32, #tpu.memory_space<vmem>>, %arg6: memref<1x128xf32, #tpu.memory_space<vmem>>, %arg7: memref<32x128xf32, #tpu.memory_space<vmem>>, %arg8: memref<1x128xf32, #tpu.memory_space<vmem>>, %arg9: memref<8x128xf32, #tpu.memory_space<vmem>>, %arg10: memref<64x128xf32, #tpu.memory_space<vmem>>, %arg11: memref<64x32xf32, #tpu.memory_space<vmem>>) attributes {dimension_semantics = [], scalar_prefetch = 0 : i64, scratch_operands = 2 : i64, tpu.core_type = #tpu.core_type<tc>} {
    %c0 = arith.constant 0 : index
    %c0_0 = arith.constant 0 : index
    %0 = vector.load %arg0[%c0, %c0_0] : memref<64x16xf32, #tpu.memory_space<vmem>>, vector<64x16xf32>
    %c0_1 = arith.constant 0 : index
    %c0_2 = arith.constant 0 : index
    %1 = vector.load %arg1[%c0_1, %c0_2] : memref<16x128xf32, #tpu.memory_space<vmem>>, vector<16x128xf32>
    %cst = arith.constant dense<0.000000e+00> : vector<64x128xf32>
    %2 = tpu.matmul %0, %1, %cst {dimension_numbers = #tpu.dot_dimension_numbers<[1], [0], [0], [1], [0, 0, 1, 1], [], []>} : vector<64x16xf32>, vector<16x128xf32>, vector<64x128xf32> -> vector<64x128xf32>
    %c0_3 = arith.constant 0 : index
    %c0_4 = arith.constant 0 : index
    %3 = vector.load %arg5[%c0_3, %c0_4] : memref<1x128xf32, #tpu.memory_space<vmem>>, vector<1x128xf32>
    %4 = vector.broadcast %3 : vector<1x128xf32> to vector<64x128xf32>
    %5 = arith.addf %2, %4 : vector<64x128xf32>
    %c0_5 = arith.constant 0 : index
    %c0_6 = arith.constant 0 : index
    %6 = vector.load %arg10[%c0_5, %c0_6] : memref<64x128xf32, #tpu.memory_space<vmem>>, vector<64x128xf32>
    tpu.vector_store %arg10[%c0_5, %c0_6], %5 {strides = array<i32>} : memref<64x128xf32, #tpu.memory_space<vmem>>, vector<64x128xf32>,
    %c0_7 = arith.constant 0 : index
    %c0_8 = arith.constant 0 : index
    %7 = vector.load %arg3[%c0_7, %c0_8] : memref<32x128xf32, #tpu.memory_space<vmem>>, vector<32x128xf32>
    %cst_9 = arith.constant 0.000000e+00 : f32
    %8 = vector.broadcast %cst_9 : f32 to vector<8x32xf32>
    %c0_i32 = arith.constant 0 : i32
    %c8_i32 = arith.constant 8 : i32
    %9 = arith.muli %c0_i32, %c8_i32 : i32
    %10 = tpu.assume_multiple %9, 8 : i32
    %11 = arith.index_cast %10 : i32 to index
    %c0_10 = arith.constant 0 : index
    %12 = vector.load %arg10[%11, %c0_10] : memref<64x128xf32, #tpu.memory_space<vmem>>, vector<8x128xf32>
    %cst_11 = arith.constant dense<0.000000e+00> : vector<8x128xf32>
    %13 = tpu.matmul %8, %7, %cst_11 {dimension_numbers = #tpu.dot_dimension_numbers<[1], [0], [0], [1], [0, 0, 1, 1], [], []>} : vector<8x32xf32>, vector<32x128xf32>, vector<8x128xf32> -> vector<8x128xf32>
    %14 = arith.addf %12, %13 : vector<8x128xf32>
    %15 = arith.negf %14 : vector<8x128xf32>
    %16 = math.exp %15 : vector<8x128xf32>
    %cst_12 = arith.constant 1.000000e+00 : f32
    %17 = vector.broadcast %cst_12 : f32 to vector<8x128xf32>
    %18 = arith.addf %17, %16 : vector<8x128xf32>
    %19 = arith.divf %17, %18 : vector<8x128xf32>
    %20 = vector.extract_strided_slice %19 {offsets = [0, 0], sizes = [8, 32], strides = [1, 1]} : vector<8x128xf32> to vector<8x32xf32>
    %21 = vector.extract_strided_slice %19 {offsets = [0, 32], sizes = [8, 32], strides = [1, 1]} : vector<8x128xf32> to vector<8x32xf32>
    %22 = vector.extract_strided_slice %19 {offsets = [0, 96], sizes = [8, 32], strides = [1, 1]} : vector<8x128xf32> to vector<8x32xf32>
    %23 = vector.extract_strided_slice %14 {offsets = [0, 64], sizes = [8, 32], strides = [1, 1]} : vector<8x128xf32> to vector<8x32xf32>
    %24 = math.tanh %23 : vector<8x32xf32>
    %25 = arith.mulf %21, %8 : vector<8x32xf32>
    %26 = arith.mulf %20, %24 : vector<8x32xf32>
    %27 = arith.addf %25, %26 : vector<8x32xf32>
    %28 = math.tanh %27 : vector<8x32xf32>
    %29 = arith.mulf %22, %28 : vector<8x32xf32>
    %30 = arith.index_cast %10 : i32 to index
    %c0_13 = arith.constant 0 : index
    %31 = vector.load %arg11[%30, %c0_13] : memref<64x32xf32, #tpu.memory_space<vmem>>, vector<8x32xf32>
    tpu.vector_store %arg11[%30, %c0_13], %29 {strides = array<i32>} : memref<64x32xf32, #tpu.memory_space<vmem>>, vector<8x32xf32>,
    %c1_i32 = arith.constant 1 : i32
    %c8_i32_14 = arith.constant 8 : i32
    %32 = arith.muli %c1_i32, %c8_i32_14 : i32
    %33 = tpu.assume_multiple %32, 8 : i32
    %34 = arith.index_cast %33 : i32 to index
    %c0_15 = arith.constant 0 : index
    %35 = vector.load %arg10[%34, %c0_15] : memref<64x128xf32, #tpu.memory_space<vmem>>, vector<8x128xf32>
    %cst_16 = arith.constant dense<0.000000e+00> : vector<8x128xf32>
    %36 = tpu.matmul %29, %7, %cst_16 {dimension_numbers = #tpu.dot_dimension_numbers<[1], [0], [0], [1], [0, 0, 1, 1], [], []>} : vector<8x32xf32>, vector<32x128xf32>, vector<8x128xf32> -> vector<8x128xf32>
    %37 = arith.addf %35, %36 : vector<8x128xf32>
    %38 = arith.negf %37 : vector<8x128xf32>
    %39 = math.exp %38 : vector<8x128xf32>
    %cst_17 = arith.constant 1.000000e+00 : f32
    %40 = vector.broadcast %cst_17 : f32 to vector<8x128xf32>
    %41 = arith.addf %40, %39 : vector<8x128xf32>
    %42 = arith.divf %40, %41 : vector<8x128xf32>
    %43 = vector.extract_strided_slice %42 {offsets = [0, 0], sizes = [8, 32], strides = [1, 1]} : vector<8x128xf32> to vector<8x32xf32>
    %44 = vector.extract_strided_slice %42 {offsets = [0, 32], sizes = [8, 32], strides = [1, 1]} : vector<8x128xf32> to vector<8x32xf32>
    %45 = vector.extract_strided_slice %42 {offsets = [0, 96], sizes = [8, 32], strides = [1, 1]} : vector<8x128xf32> to vector<8x32xf32>
    %46 = vector.extract_strided_slice %37 {offsets = [0, 64], sizes = [8, 32], strides = [1, 1]} : vector<8x128xf32> to vector<8x32xf32>
    %47 = math.tanh %46 : vector<8x32xf32>
    %48 = arith.mulf %44, %27 : vector<8x32xf32>
    %49 = arith.mulf %43, %47 : vector<8x32xf32>
    %50 = arith.addf %48, %49 : vector<8x32xf32>
    %51 = math.tanh %50 : vector<8x32xf32>
    %52 = arith.mulf %45, %51 : vector<8x32xf32>
    %53 = arith.index_cast %33 : i32 to index
    %c0_18 = arith.constant 0 : index
    %54 = vector.load %arg11[%53, %c0_18] : memref<64x32xf32, #tpu.memory_space<vmem>>, vector<8x32xf32>
    tpu.vector_store %arg11[%53, %c0_18], %52 {strides = array<i32>} : memref<64x32xf32, #tpu.memory_space<vmem>>, vector<8x32xf32>,
    %c2_i32 = arith.constant 2 : i32
    %c8_i32_19 = arith.constant 8 : i32
    %55 = arith.muli %c2_i32, %c8_i32_19 : i32
    %56 = tpu.assume_multiple %55, 8 : i32
    %57 = arith.index_cast %56 : i32 to index
    %c0_20 = arith.constant 0 : index
    %58 = vector.load %arg10[%57, %c0_20] : memref<64x128xf32, #tpu.memory_space<vmem>>, vector<8x128xf32>
    %cst_21 = arith.constant dense<0.000000e+00> : vector<8x128xf32>
    %59 = tpu.matmul %52, %7, %cst_21 {dimension_numbers = #tpu.dot_dimension_numbers<[1], [0], [0], [1], [0, 0, 1, 1], [], []>} : vector<8x32xf32>, vector<32x128xf32>, vector<8x128xf32> -> vector<8x128xf32>
    %60 = arith.addf %58, %59 : vector<8x128xf32>
    %61 = arith.negf %60 : vector<8x128xf32>
    %62 = math.exp %61 : vector<8x128xf32>
    %cst_22 = arith.constant 1.000000e+00 : f32
    %63 = vector.broadcast %cst_22 : f32 to vector<8x128xf32>
    %64 = arith.addf %63, %62 : vector<8x128xf32>
    %65 = arith.divf %63, %64 : vector<8x128xf32>
    %66 = vector.extract_strided_slice %65 {offsets = [0, 0], sizes = [8, 32], strides = [1, 1]} : vector<8x128xf32> to vector<8x32xf32>
    %67 = vector.extract_strided_slice %65 {offsets = [0, 32], sizes = [8, 32], strides = [1, 1]} : vector<8x128xf32> to vector<8x32xf32>
    %68 = vector.extract_strided_slice %65 {offsets = [0, 96], sizes = [8, 32], strides = [1, 1]} : vector<8x128xf32> to vector<8x32xf32>
    %69 = vector.extract_strided_slice %60 {offsets = [0, 64], sizes = [8, 32], strides = [1, 1]} : vector<8x128xf32> to vector<8x32xf32>
    %70 = math.tanh %69 : vector<8x32xf32>
    %71 = arith.mulf %67, %50 : vector<8x32xf32>
    %72 = arith.mulf %66, %70 : vector<8x32xf32>
    %73 = arith.addf %71, %72 : vector<8x32xf32>
    %74 = math.tanh %73 : vector<8x32xf32>
    %75 = arith.mulf %68, %74 : vector<8x32xf32>
    %76 = arith.index_cast %56 : i32 to index
    %c0_23 = arith.constant 0 : index
    %77 = vector.load %arg11[%76, %c0_23] : memref<64x32xf32, #tpu.memory_space<vmem>>, vector<8x32xf32>
    tpu.vector_store %arg11[%76, %c0_23], %75 {strides = array<i32>} : memref<64x32xf32, #tpu.memory_space<vmem>>, vector<8x32xf32>,
    %c3_i32 = arith.constant 3 : i32
    %c8_i32_24 = arith.constant 8 : i32
    %78 = arith.muli %c3_i32, %c8_i32_24 : i32
    %79 = tpu.assume_multiple %78, 8 : i32
    %80 = arith.index_cast %79 : i32 to index
    %c0_25 = arith.constant 0 : index
    %81 = vector.load %arg10[%80, %c0_25] : memref<64x128xf32, #tpu.memory_space<vmem>>, vector<8x128xf32>
    %cst_26 = arith.constant dense<0.000000e+00> : vector<8x128xf32>
    %82 = tpu.matmul %75, %7, %cst_26 {dimension_numbers = #tpu.dot_dimension_numbers<[1], [0], [0], [1], [0, 0, 1, 1], [], []>} : vector<8x32xf32>, vector<32x128xf32>, vector<8x128xf32> -> vector<8x128xf32>
    %83 = arith.addf %81, %82 : vector<8x128xf32>
    %84 = arith.negf %83 : vector<8x128xf32>
    %85 = math.exp %84 : vector<8x128xf32>
    %cst_27 = arith.constant 1.000000e+00 : f32
    %86 = vector.broadcast %cst_27 : f32 to vector<8x128xf32>
    %87 = arith.addf %86, %85 : vector<8x128xf32>
    %88 = arith.divf %86, %87 : vector<8x128xf32>
    %89 = vector.extract_strided_slice %88 {offsets = [0, 0], sizes = [8, 32], strides = [1, 1]} : vector<8x128xf32> to vector<8x32xf32>
    %90 = vector.extract_strided_slice %88 {offsets = [0, 32], sizes = [8, 32], strides = [1, 1]} : vector<8x128xf32> to vector<8x32xf32>
    %91 = vector.extract_strided_slice %88 {offsets = [0, 96], sizes = [8, 32], strides = [1, 1]} : vector<8x128xf32> to vector<8x32xf32>
    %92 = vector.extract_strided_slice %83 {offsets = [0, 64], sizes = [8, 32], strides = [1, 1]} : vector<8x128xf32> to vector<8x32xf32>
    %93 = math.tanh %92 : vector<8x32xf32>
    %94 = arith.mulf %90, %73 : vector<8x32xf32>
    %95 = arith.mulf %89, %93 : vector<8x32xf32>
    %96 = arith.addf %94, %95 : vector<8x32xf32>
    %97 = math.tanh %96 : vector<8x32xf32>
    %98 = arith.mulf %91, %97 : vector<8x32xf32>
    %99 = arith.index_cast %79 : i32 to index
    %c0_28 = arith.constant 0 : index
    %100 = vector.load %arg11[%99, %c0_28] : memref<64x32xf32, #tpu.memory_space<vmem>>, vector<8x32xf32>
    tpu.vector_store %arg11[%99, %c0_28], %98 {strides = array<i32>} : memref<64x32xf32, #tpu.memory_space<vmem>>, vector<8x32xf32>,
    %c4_i32 = arith.constant 4 : i32
    %c8_i32_29 = arith.constant 8 : i32
    %101 = arith.muli %c4_i32, %c8_i32_29 : i32
    %102 = tpu.assume_multiple %101, 8 : i32
    %103 = arith.index_cast %102 : i32 to index
    %c0_30 = arith.constant 0 : index
    %104 = vector.load %arg10[%103, %c0_30] : memref<64x128xf32, #tpu.memory_space<vmem>>, vector<8x128xf32>
    %cst_31 = arith.constant dense<0.000000e+00> : vector<8x128xf32>
    %105 = tpu.matmul %98, %7, %cst_31 {dimension_numbers = #tpu.dot_dimension_numbers<[1], [0], [0], [1], [0, 0, 1, 1], [], []>} : vector<8x32xf32>, vector<32x128xf32>, vector<8x128xf32> -> vector<8x128xf32>
    %106 = arith.addf %104, %105 : vector<8x128xf32>
    %107 = arith.negf %106 : vector<8x128xf32>
    %108 = math.exp %107 : vector<8x128xf32>
    %cst_32 = arith.constant 1.000000e+00 : f32
    %109 = vector.broadcast %cst_32 : f32 to vector<8x128xf32>
    %110 = arith.addf %109, %108 : vector<8x128xf32>
    %111 = arith.divf %109, %110 : vector<8x128xf32>
    %112 = vector.extract_strided_slice %111 {offsets = [0, 0], sizes = [8, 32], strides = [1, 1]} : vector<8x128xf32> to vector<8x32xf32>
    %113 = vector.extract_strided_slice %111 {offsets = [0, 32], sizes = [8, 32], strides = [1, 1]} : vector<8x128xf32> to vector<8x32xf32>
    %114 = vector.extract_strided_slice %111 {offsets = [0, 96], sizes = [8, 32], strides = [1, 1]} : vector<8x128xf32> to vector<8x32xf32>
    %115 = vector.extract_strided_slice %106 {offsets = [0, 64], sizes = [8, 32], strides = [1, 1]} : vector<8x128xf32> to vector<8x32xf32>
    %116 = math.tanh %115 : vector<8x32xf32>
    %117 = arith.mulf %113, %96 : vector<8x32xf32>
    %118 = arith.mulf %112, %116 : vector<8x32xf32>
    %119 = arith.addf %117, %118 : vector<8x32xf32>
    %120 = math.tanh %119 : vector<8x32xf32>
    %121 = arith.mulf %114, %120 : vector<8x32xf32>
    %122 = arith.index_cast %102 : i32 to index
    %c0_33 = arith.constant 0 : index
    %123 = vector.load %arg11[%122, %c0_33] : memref<64x32xf32, #tpu.memory_space<vmem>>, vector<8x32xf32>
    tpu.vector_store %arg11[%122, %c0_33], %121 {strides = array<i32>} : memref<64x32xf32, #tpu.memory_space<vmem>>, vector<8x32xf32>,
    %c5_i32 = arith.constant 5 : i32
    %c8_i32_34 = arith.constant 8 : i32
    %124 = arith.muli %c5_i32, %c8_i32_34 : i32
    %125 = tpu.assume_multiple %124, 8 : i32
    %126 = arith.index_cast %125 : i32 to index
    %c0_35 = arith.constant 0 : index
    %127 = vector.load %arg10[%126, %c0_35] : memref<64x128xf32, #tpu.memory_space<vmem>>, vector<8x128xf32>
    %cst_36 = arith.constant dense<0.000000e+00> : vector<8x128xf32>
    %128 = tpu.matmul %121, %7, %cst_36 {dimension_numbers = #tpu.dot_dimension_numbers<[1], [0], [0], [1], [0, 0, 1, 1], [], []>} : vector<8x32xf32>, vector<32x128xf32>, vector<8x128xf32> -> vector<8x128xf32>
    %129 = arith.addf %127, %128 : vector<8x128xf32>
    %130 = arith.negf %129 : vector<8x128xf32>
    %131 = math.exp %130 : vector<8x128xf32>
    %cst_37 = arith.constant 1.000000e+00 : f32
    %132 = vector.broadcast %cst_37 : f32 to vector<8x128xf32>
    %133 = arith.addf %132, %131 : vector<8x128xf32>
    %134 = arith.divf %132, %133 : vector<8x128xf32>
    %135 = vector.extract_strided_slice %134 {offsets = [0, 0], sizes = [8, 32], strides = [1, 1]} : vector<8x128xf32> to vector<8x32xf32>
    %136 = vector.extract_strided_slice %134 {offsets = [0, 32], sizes = [8, 32], strides = [1, 1]} : vector<8x128xf32> to vector<8x32xf32>
    %137 = vector.extract_strided_slice %134 {offsets = [0, 96], sizes = [8, 32], strides = [1, 1]} : vector<8x128xf32> to vector<8x32xf32>
    %138 = vector.extract_strided_slice %129 {offsets = [0, 64], sizes = [8, 32], strides = [1, 1]} : vector<8x128xf32> to vector<8x32xf32>
    %139 = math.tanh %138 : vector<8x32xf32>
    %140 = arith.mulf %136, %119 : vector<8x32xf32>
    %141 = arith.mulf %135, %139 : vector<8x32xf32>
    %142 = arith.addf %140, %141 : vector<8x32xf32>
    %143 = math.tanh %142 : vector<8x32xf32>
    %144 = arith.mulf %137, %143 : vector<8x32xf32>
    %145 = arith.index_cast %125 : i32 to index
    %c0_38 = arith.constant 0 : index
    %146 = vector.load %arg11[%145, %c0_38] : memref<64x32xf32, #tpu.memory_space<vmem>>, vector<8x32xf32>
    tpu.vector_store %arg11[%145, %c0_38], %144 {strides = array<i32>} : memref<64x32xf32, #tpu.memory_space<vmem>>, vector<8x32xf32>,
    %c6_i32 = arith.constant 6 : i32
    %c8_i32_39 = arith.constant 8 : i32
    %147 = arith.muli %c6_i32, %c8_i32_39 : i32
    %148 = tpu.assume_multiple %147, 8 : i32
    %149 = arith.index_cast %148 : i32 to index
    %c0_40 = arith.constant 0 : index
    %150 = vector.load %arg10[%149, %c0_40] : memref<64x128xf32, #tpu.memory_space<vmem>>, vector<8x128xf32>
    %cst_41 = arith.constant dense<0.000000e+00> : vector<8x128xf32>
    %151 = tpu.matmul %144, %7, %cst_41 {dimension_numbers = #tpu.dot_dimension_numbers<[1], [0], [0], [1], [0, 0, 1, 1], [], []>} : vector<8x32xf32>, vector<32x128xf32>, vector<8x128xf32> -> vector<8x128xf32>
    %152 = arith.addf %150, %151 : vector<8x128xf32>
    %153 = arith.negf %152 : vector<8x128xf32>
    %154 = math.exp %153 : vector<8x128xf32>
    %cst_42 = arith.constant 1.000000e+00 : f32
    %155 = vector.broadcast %cst_42 : f32 to vector<8x128xf32>
    %156 = arith.addf %155, %154 : vector<8x128xf32>
    %157 = arith.divf %155, %156 : vector<8x128xf32>
    %158 = vector.extract_strided_slice %157 {offsets = [0, 0], sizes = [8, 32], strides = [1, 1]} : vector<8x128xf32> to vector<8x32xf32>
    %159 = vector.extract_strided_slice %157 {offsets = [0, 32], sizes = [8, 32], strides = [1, 1]} : vector<8x128xf32> to vector<8x32xf32>
    %160 = vector.extract_strided_slice %157 {offsets = [0, 96], sizes = [8, 32], strides = [1, 1]} : vector<8x128xf32> to vector<8x32xf32>
    %161 = vector.extract_strided_slice %152 {offsets = [0, 64], sizes = [8, 32], strides = [1, 1]} : vector<8x128xf32> to vector<8x32xf32>
    %162 = math.tanh %161 : vector<8x32xf32>
    %163 = arith.mulf %159, %142 : vector<8x32xf32>
    %164 = arith.mulf %158, %162 : vector<8x32xf32>
    %165 = arith.addf %163, %164 : vector<8x32xf32>
    %166 = math.tanh %165 : vector<8x32xf32>
    %167 = arith.mulf %160, %166 : vector<8x32xf32>
    %168 = arith.index_cast %148 : i32 to index
    %c0_43 = arith.constant 0 : index
    %169 = vector.load %arg11[%168, %c0_43] : memref<64x32xf32, #tpu.memory_space<vmem>>, vector<8x32xf32>
    tpu.vector_store %arg11[%168, %c0_43], %167 {strides = array<i32>} : memref<64x32xf32, #tpu.memory_space<vmem>>, vector<8x32xf32>,
    %c7_i32 = arith.constant 7 : i32
    %c8_i32_44 = arith.constant 8 : i32
    %170 = arith.muli %c7_i32, %c8_i32_44 : i32
    %171 = tpu.assume_multiple %170, 8 : i32
    %172 = arith.index_cast %171 : i32 to index
    %c0_45 = arith.constant 0 : index
    %173 = vector.load %arg10[%172, %c0_45] : memref<64x128xf32, #tpu.memory_space<vmem>>, vector<8x128xf32>
    %cst_46 = arith.constant dense<0.000000e+00> : vector<8x128xf32>
    %174 = tpu.matmul %167, %7, %cst_46 {dimension_numbers = #tpu.dot_dimension_numbers<[1], [0], [0], [1], [0, 0, 1, 1], [], []>} : vector<8x32xf32>, vector<32x128xf32>, vector<8x128xf32> -> vector<8x128xf32>
    %175 = arith.addf %173, %174 : vector<8x128xf32>
    %176 = arith.negf %175 : vector<8x128xf32>
    %177 = math.exp %176 : vector<8x128xf32>
    %cst_47 = arith.constant 1.000000e+00 : f32
    %178 = vector.broadcast %cst_47 : f32 to vector<8x128xf32>
    %179 = arith.addf %178, %177 : vector<8x128xf32>
    %180 = arith.divf %178, %179 : vector<8x128xf32>
    %181 = vector.extract_strided_slice %180 {offsets = [0, 0], sizes = [8, 32], strides = [1, 1]} : vector<8x128xf32> to vector<8x32xf32>
    %182 = vector.extract_strided_slice %180 {offsets = [0, 32], sizes = [8, 32], strides = [1, 1]} : vector<8x128xf32> to vector<8x32xf32>
    %183 = vector.extract_strided_slice %180 {offsets = [0, 96], sizes = [8, 32], strides = [1, 1]} : vector<8x128xf32> to vector<8x32xf32>
    %184 = vector.extract_strided_slice %175 {offsets = [0, 64], sizes = [8, 32], strides = [1, 1]} : vector<8x128xf32> to vector<8x32xf32>
    %185 = math.tanh %184 : vector<8x32xf32>
    %186 = arith.mulf %182, %165 : vector<8x32xf32>
    %187 = arith.mulf %181, %185 : vector<8x32xf32>
    %188 = arith.addf %186, %187 : vector<8x32xf32>
    %189 = math.tanh %188 : vector<8x32xf32>
    %190 = arith.mulf %183, %189 : vector<8x32xf32>
    %191 = arith.index_cast %171 : i32 to index
    %c0_48 = arith.constant 0 : index
    %192 = vector.load %arg11[%191, %c0_48] : memref<64x32xf32, #tpu.memory_space<vmem>>, vector<8x32xf32>
    tpu.vector_store %arg11[%191, %c0_48], %190 {strides = array<i32>} : memref<64x32xf32, #tpu.memory_space<vmem>>, vector<8x32xf32>,
    %c8_i32_49 = arith.constant 8 : i32
    %c0_50 = arith.constant 0 : index
    %c0_51 = arith.constant 0 : index
    %193 = vector.load %arg11[%c0_50, %c0_51] : memref<64x32xf32, #tpu.memory_space<vmem>>, vector<64x32xf32>
    %c0_52 = arith.constant 0 : index
    %c0_53 = arith.constant 0 : index
    %194 = vector.load %arg2[%c0_52, %c0_53] : memref<32x128xf32, #tpu.memory_space<vmem>>, vector<32x128xf32>
    %cst_54 = arith.constant dense<0.000000e+00> : vector<64x128xf32>
    %195 = tpu.matmul %193, %194, %cst_54 {dimension_numbers = #tpu.dot_dimension_numbers<[1], [0], [0], [1], [0, 0, 1, 1], [], []>} : vector<64x32xf32>, vector<32x128xf32>, vector<64x128xf32> -> vector<64x128xf32>
    %c0_55 = arith.constant 0 : index
    %c0_56 = arith.constant 0 : index
    %196 = vector.load %arg6[%c0_55, %c0_56] : memref<1x128xf32, #tpu.memory_space<vmem>>, vector<1x128xf32>
    %197 = vector.broadcast %196 : vector<1x128xf32> to vector<64x128xf32>
    %198 = arith.addf %195, %197 : vector<64x128xf32>
    %c0_57 = arith.constant 0 : index
    %c0_58 = arith.constant 0 : index
    %199 = vector.load %arg10[%c0_57, %c0_58] : memref<64x128xf32, #tpu.memory_space<vmem>>, vector<64x128xf32>
    tpu.vector_store %arg10[%c0_57, %c0_58], %198 {strides = array<i32>} : memref<64x128xf32, #tpu.memory_space<vmem>>, vector<64x128xf32>,
    %c0_59 = arith.constant 0 : index
    %c0_60 = arith.constant 0 : index
    %200 = vector.load %arg4[%c0_59, %c0_60] : memref<32x128xf32, #tpu.memory_space<vmem>>, vector<32x128xf32>
    %cst_61 = arith.constant 0.000000e+00 : f32
    %201 = vector.broadcast %cst_61 : f32 to vector<8x32xf32>
    %c0_i32_62 = arith.constant 0 : i32
    %c8_i32_63 = arith.constant 8 : i32
    %202 = arith.muli %c0_i32_62, %c8_i32_63 : i32
    %203 = tpu.assume_multiple %202, 8 : i32
    %204 = arith.index_cast %203 : i32 to index
    %c0_64 = arith.constant 0 : index
    %205 = vector.load %arg10[%204, %c0_64] : memref<64x128xf32, #tpu.memory_space<vmem>>, vector<8x128xf32>
    %cst_65 = arith.constant dense<0.000000e+00> : vector<8x128xf32>
    %206 = tpu.matmul %201, %200, %cst_65 {dimension_numbers = #tpu.dot_dimension_numbers<[1], [0], [0], [1], [0, 0, 1, 1], [], []>} : vector<8x32xf32>, vector<32x128xf32>, vector<8x128xf32> -> vector<8x128xf32>
    %207 = arith.addf %205, %206 : vector<8x128xf32>
    %208 = arith.negf %207 : vector<8x128xf32>
    %209 = math.exp %208 : vector<8x128xf32>
    %cst_66 = arith.constant 1.000000e+00 : f32
    %210 = vector.broadcast %cst_66 : f32 to vector<8x128xf32>
    %211 = arith.addf %210, %209 : vector<8x128xf32>
    %212 = arith.divf %210, %211 : vector<8x128xf32>
    %213 = vector.extract_strided_slice %212 {offsets = [0, 0], sizes = [8, 32], strides = [1, 1]} : vector<8x128xf32> to vector<8x32xf32>
    %214 = vector.extract_strided_slice %212 {offsets = [0, 32], sizes = [8, 32], strides = [1, 1]} : vector<8x128xf32> to vector<8x32xf32>
    %215 = vector.extract_strided_slice %212 {offsets = [0, 96], sizes = [8, 32], strides = [1, 1]} : vector<8x128xf32> to vector<8x32xf32>
    %216 = vector.extract_strided_slice %207 {offsets = [0, 64], sizes = [8, 32], strides = [1, 1]} : vector<8x128xf32> to vector<8x32xf32>
    %217 = math.tanh %216 : vector<8x32xf32>
    %218 = arith.mulf %214, %201 : vector<8x32xf32>
    %219 = arith.mulf %213, %217 : vector<8x32xf32>
    %220 = arith.addf %218, %219 : vector<8x32xf32>
    %221 = math.tanh %220 : vector<8x32xf32>
    %222 = arith.mulf %215, %221 : vector<8x32xf32>
    %c1_i32_67 = arith.constant 1 : i32
    %c8_i32_68 = arith.constant 8 : i32
    %223 = arith.muli %c1_i32_67, %c8_i32_68 : i32
    %224 = tpu.assume_multiple %223, 8 : i32
    %225 = arith.index_cast %224 : i32 to index
    %c0_69 = arith.constant 0 : index
    %226 = vector.load %arg10[%225, %c0_69] : memref<64x128xf32, #tpu.memory_space<vmem>>, vector<8x128xf32>
    %cst_70 = arith.constant dense<0.000000e+00> : vector<8x128xf32>
    %227 = tpu.matmul %222, %200, %cst_70 {dimension_numbers = #tpu.dot_dimension_numbers<[1], [0], [0], [1], [0, 0, 1, 1], [], []>} : vector<8x32xf32>, vector<32x128xf32>, vector<8x128xf32> -> vector<8x128xf32>
    %228 = arith.addf %226, %227 : vector<8x128xf32>
    %229 = arith.negf %228 : vector<8x128xf32>
    %230 = math.exp %229 : vector<8x128xf32>
    %cst_71 = arith.constant 1.000000e+00 : f32
    %231 = vector.broadcast %cst_71 : f32 to vector<8x128xf32>
    %232 = arith.addf %231, %230 : vector<8x128xf32>
    %233 = arith.divf %231, %232 : vector<8x128xf32>
    %234 = vector.extract_strided_slice %233 {offsets = [0, 0], sizes = [8, 32], strides = [1, 1]} : vector<8x128xf32> to vector<8x32xf32>
    %235 = vector.extract_strided_slice %233 {offsets = [0, 32], sizes = [8, 32], strides = [1, 1]} : vector<8x128xf32> to vector<8x32xf32>
    %236 = vector.extract_strided_slice %233 {offsets = [0, 96], sizes = [8, 32], strides = [1, 1]} : vector<8x128xf32> to vector<8x32xf32>
    %237 = vector.extract_strided_slice %228 {offsets = [0, 64], sizes = [8, 32], strides = [1, 1]} : vector<8x128xf32> to vector<8x32xf32>
    %238 = math.tanh %237 : vector<8x32xf32>
    %239 = arith.mulf %235, %220 : vector<8x32xf32>
    %240 = arith.mulf %234, %238 : vector<8x32xf32>
    %241 = arith.addf %239, %240 : vector<8x32xf32>
    %242 = math.tanh %241 : vector<8x32xf32>
    %243 = arith.mulf %236, %242 : vector<8x32xf32>
    %c2_i32_72 = arith.constant 2 : i32
    %c8_i32_73 = arith.constant 8 : i32
    %244 = arith.muli %c2_i32_72, %c8_i32_73 : i32
    %245 = tpu.assume_multiple %244, 8 : i32
    %246 = arith.index_cast %245 : i32 to index
    %c0_74 = arith.constant 0 : index
    %247 = vector.load %arg10[%246, %c0_74] : memref<64x128xf32, #tpu.memory_space<vmem>>, vector<8x128xf32>
    %cst_75 = arith.constant dense<0.000000e+00> : vector<8x128xf32>
    %248 = tpu.matmul %243, %200, %cst_75 {dimension_numbers = #tpu.dot_dimension_numbers<[1], [0], [0], [1], [0, 0, 1, 1], [], []>} : vector<8x32xf32>, vector<32x128xf32>, vector<8x128xf32> -> vector<8x128xf32>
    %249 = arith.addf %247, %248 : vector<8x128xf32>
    %250 = arith.negf %249 : vector<8x128xf32>
    %251 = math.exp %250 : vector<8x128xf32>
    %cst_76 = arith.constant 1.000000e+00 : f32
    %252 = vector.broadcast %cst_76 : f32 to vector<8x128xf32>
    %253 = arith.addf %252, %251 : vector<8x128xf32>
    %254 = arith.divf %252, %253 : vector<8x128xf32>
    %255 = vector.extract_strided_slice %254 {offsets = [0, 0], sizes = [8, 32], strides = [1, 1]} : vector<8x128xf32> to vector<8x32xf32>
    %256 = vector.extract_strided_slice %254 {offsets = [0, 32], sizes = [8, 32], strides = [1, 1]} : vector<8x128xf32> to vector<8x32xf32>
    %257 = vector.extract_strided_slice %254 {offsets = [0, 96], sizes = [8, 32], strides = [1, 1]} : vector<8x128xf32> to vector<8x32xf32>
    %258 = vector.extract_strided_slice %249 {offsets = [0, 64], sizes = [8, 32], strides = [1, 1]} : vector<8x128xf32> to vector<8x32xf32>
    %259 = math.tanh %258 : vector<8x32xf32>
    %260 = arith.mulf %256, %241 : vector<8x32xf32>
    %261 = arith.mulf %255, %259 : vector<8x32xf32>
    %262 = arith.addf %260, %261 : vector<8x32xf32>
    %263 = math.tanh %262 : vector<8x32xf32>
    %264 = arith.mulf %257, %263 : vector<8x32xf32>
    %c3_i32_77 = arith.constant 3 : i32
    %c8_i32_78 = arith.constant 8 : i32
    %265 = arith.muli %c3_i32_77, %c8_i32_78 : i32
    %266 = tpu.assume_multiple %265, 8 : i32
    %267 = arith.index_cast %266 : i32 to index
    %c0_79 = arith.constant 0 : index
    %268 = vector.load %arg10[%267, %c0_79] : memref<64x128xf32, #tpu.memory_space<vmem>>, vector<8x128xf32>
    %cst_80 = arith.constant dense<0.000000e+00> : vector<8x128xf32>
    %269 = tpu.matmul %264, %200, %cst_80 {dimension_numbers = #tpu.dot_dimension_numbers<[1], [0], [0], [1], [0, 0, 1, 1], [], []>} : vector<8x32xf32>, vector<32x128xf32>, vector<8x128xf32> -> vector<8x128xf32>
    %270 = arith.addf %268, %269 : vector<8x128xf32>
    %271 = arith.negf %270 : vector<8x128xf32>
    %272 = math.exp %271 : vector<8x128xf32>
    %cst_81 = arith.constant 1.000000e+00 : f32
    %273 = vector.broadcast %cst_81 : f32 to vector<8x128xf32>
    %274 = arith.addf %273, %272 : vector<8x128xf32>
    %275 = arith.divf %273, %274 : vector<8x128xf32>
    %276 = vector.extract_strided_slice %275 {offsets = [0, 0], sizes = [8, 32], strides = [1, 1]} : vector<8x128xf32> to vector<8x32xf32>
    %277 = vector.extract_strided_slice %275 {offsets = [0, 32], sizes = [8, 32], strides = [1, 1]} : vector<8x128xf32> to vector<8x32xf32>
    %278 = vector.extract_strided_slice %275 {offsets = [0, 96], sizes = [8, 32], strides = [1, 1]} : vector<8x128xf32> to vector<8x32xf32>
    %279 = vector.extract_strided_slice %270 {offsets = [0, 64], sizes = [8, 32], strides = [1, 1]} : vector<8x128xf32> to vector<8x32xf32>
    %280 = math.tanh %279 : vector<8x32xf32>
    %281 = arith.mulf %277, %262 : vector<8x32xf32>
    %282 = arith.mulf %276, %280 : vector<8x32xf32>
    %283 = arith.addf %281, %282 : vector<8x32xf32>
    %284 = math.tanh %283 : vector<8x32xf32>
    %285 = arith.mulf %278, %284 : vector<8x32xf32>
    %c4_i32_82 = arith.constant 4 : i32
    %c8_i32_83 = arith.constant 8 : i32
    %286 = arith.muli %c4_i32_82, %c8_i32_83 : i32
    %287 = tpu.assume_multiple %286, 8 : i32
    %288 = arith.index_cast %287 : i32 to index
    %c0_84 = arith.constant 0 : index
    %289 = vector.load %arg10[%288, %c0_84] : memref<64x128xf32, #tpu.memory_space<vmem>>, vector<8x128xf32>
    %cst_85 = arith.constant dense<0.000000e+00> : vector<8x128xf32>
    %290 = tpu.matmul %285, %200, %cst_85 {dimension_numbers = #tpu.dot_dimension_numbers<[1], [0], [0], [1], [0, 0, 1, 1], [], []>} : vector<8x32xf32>, vector<32x128xf32>, vector<8x128xf32> -> vector<8x128xf32>
    %291 = arith.addf %289, %290 : vector<8x128xf32>
    %292 = arith.negf %291 : vector<8x128xf32>
    %293 = math.exp %292 : vector<8x128xf32>
    %cst_86 = arith.constant 1.000000e+00 : f32
    %294 = vector.broadcast %cst_86 : f32 to vector<8x128xf32>
    %295 = arith.addf %294, %293 : vector<8x128xf32>
    %296 = arith.divf %294, %295 : vector<8x128xf32>
    %297 = vector.extract_strided_slice %296 {offsets = [0, 0], sizes = [8, 32], strides = [1, 1]} : vector<8x128xf32> to vector<8x32xf32>
    %298 = vector.extract_strided_slice %296 {offsets = [0, 32], sizes = [8, 32], strides = [1, 1]} : vector<8x128xf32> to vector<8x32xf32>
    %299 = vector.extract_strided_slice %296 {offsets = [0, 96], sizes = [8, 32], strides = [1, 1]} : vector<8x128xf32> to vector<8x32xf32>
    %300 = vector.extract_strided_slice %291 {offsets = [0, 64], sizes = [8, 32], strides = [1, 1]} : vector<8x128xf32> to vector<8x32xf32>
    %301 = math.tanh %300 : vector<8x32xf32>
    %302 = arith.mulf %298, %283 : vector<8x32xf32>
    %303 = arith.mulf %297, %301 : vector<8x32xf32>
    %304 = arith.addf %302, %303 : vector<8x32xf32>
    %305 = math.tanh %304 : vector<8x32xf32>
    %306 = arith.mulf %299, %305 : vector<8x32xf32>
    %c5_i32_87 = arith.constant 5 : i32
    %c8_i32_88 = arith.constant 8 : i32
    %307 = arith.muli %c5_i32_87, %c8_i32_88 : i32
    %308 = tpu.assume_multiple %307, 8 : i32
    %309 = arith.index_cast %308 : i32 to index
    %c0_89 = arith.constant 0 : index
    %310 = vector.load %arg10[%309, %c0_89] : memref<64x128xf32, #tpu.memory_space<vmem>>, vector<8x128xf32>
    %cst_90 = arith.constant dense<0.000000e+00> : vector<8x128xf32>
    %311 = tpu.matmul %306, %200, %cst_90 {dimension_numbers = #tpu.dot_dimension_numbers<[1], [0], [0], [1], [0, 0, 1, 1], [], []>} : vector<8x32xf32>, vector<32x128xf32>, vector<8x128xf32> -> vector<8x128xf32>
    %312 = arith.addf %310, %311 : vector<8x128xf32>
    %313 = arith.negf %312 : vector<8x128xf32>
    %314 = math.exp %313 : vector<8x128xf32>
    %cst_91 = arith.constant 1.000000e+00 : f32
    %315 = vector.broadcast %cst_91 : f32 to vector<8x128xf32>
    %316 = arith.addf %315, %314 : vector<8x128xf32>
    %317 = arith.divf %315, %316 : vector<8x128xf32>
    %318 = vector.extract_strided_slice %317 {offsets = [0, 0], sizes = [8, 32], strides = [1, 1]} : vector<8x128xf32> to vector<8x32xf32>
    %319 = vector.extract_strided_slice %317 {offsets = [0, 32], sizes = [8, 32], strides = [1, 1]} : vector<8x128xf32> to vector<8x32xf32>
    %320 = vector.extract_strided_slice %317 {offsets = [0, 96], sizes = [8, 32], strides = [1, 1]} : vector<8x128xf32> to vector<8x32xf32>
    %321 = vector.extract_strided_slice %312 {offsets = [0, 64], sizes = [8, 32], strides = [1, 1]} : vector<8x128xf32> to vector<8x32xf32>
    %322 = math.tanh %321 : vector<8x32xf32>
    %323 = arith.mulf %319, %304 : vector<8x32xf32>
    %324 = arith.mulf %318, %322 : vector<8x32xf32>
    %325 = arith.addf %323, %324 : vector<8x32xf32>
    %326 = math.tanh %325 : vector<8x32xf32>
    %327 = arith.mulf %320, %326 : vector<8x32xf32>
    %c6_i32_92 = arith.constant 6 : i32
    %c8_i32_93 = arith.constant 8 : i32
    %328 = arith.muli %c6_i32_92, %c8_i32_93 : i32
    %329 = tpu.assume_multiple %328, 8 : i32
    %330 = arith.index_cast %329 : i32 to index
    %c0_94 = arith.constant 0 : index
    %331 = vector.load %arg10[%330, %c0_94] : memref<64x128xf32, #tpu.memory_space<vmem>>, vector<8x128xf32>
    %cst_95 = arith.constant dense<0.000000e+00> : vector<8x128xf32>
    %332 = tpu.matmul %327, %200, %cst_95 {dimension_numbers = #tpu.dot_dimension_numbers<[1], [0], [0], [1], [0, 0, 1, 1], [], []>} : vector<8x32xf32>, vector<32x128xf32>, vector<8x128xf32> -> vector<8x128xf32>
    %333 = arith.addf %331, %332 : vector<8x128xf32>
    %334 = arith.negf %333 : vector<8x128xf32>
    %335 = math.exp %334 : vector<8x128xf32>
    %cst_96 = arith.constant 1.000000e+00 : f32
    %336 = vector.broadcast %cst_96 : f32 to vector<8x128xf32>
    %337 = arith.addf %336, %335 : vector<8x128xf32>
    %338 = arith.divf %336, %337 : vector<8x128xf32>
    %339 = vector.extract_strided_slice %338 {offsets = [0, 0], sizes = [8, 32], strides = [1, 1]} : vector<8x128xf32> to vector<8x32xf32>
    %340 = vector.extract_strided_slice %338 {offsets = [0, 32], sizes = [8, 32], strides = [1, 1]} : vector<8x128xf32> to vector<8x32xf32>
    %341 = vector.extract_strided_slice %338 {offsets = [0, 96], sizes = [8, 32], strides = [1, 1]} : vector<8x128xf32> to vector<8x32xf32>
    %342 = vector.extract_strided_slice %333 {offsets = [0, 64], sizes = [8, 32], strides = [1, 1]} : vector<8x128xf32> to vector<8x32xf32>
    %343 = math.tanh %342 : vector<8x32xf32>
    %344 = arith.mulf %340, %325 : vector<8x32xf32>
    %345 = arith.mulf %339, %343 : vector<8x32xf32>
    %346 = arith.addf %344, %345 : vector<8x32xf32>
    %347 = math.tanh %346 : vector<8x32xf32>
    %348 = arith.mulf %341, %347 : vector<8x32xf32>
    %c7_i32_97 = arith.constant 7 : i32
    %c8_i32_98 = arith.constant 8 : i32
    %349 = arith.muli %c7_i32_97, %c8_i32_98 : i32
    %350 = tpu.assume_multiple %349, 8 : i32
    %351 = arith.index_cast %350 : i32 to index
    %c0_99 = arith.constant 0 : index
    %352 = vector.load %arg10[%351, %c0_99] : memref<64x128xf32, #tpu.memory_space<vmem>>, vector<8x128xf32>
    %cst_100 = arith.constant dense<0.000000e+00> : vector<8x128xf32>
    %353 = tpu.matmul %348, %200, %cst_100 {dimension_numbers = #tpu.dot_dimension_numbers<[1], [0], [0], [1], [0, 0, 1, 1], [], []>} : vector<8x32xf32>, vector<32x128xf32>, vector<8x128xf32> -> vector<8x128xf32>
    %354 = arith.addf %352, %353 : vector<8x128xf32>
    %355 = arith.negf %354 : vector<8x128xf32>
    %356 = math.exp %355 : vector<8x128xf32>
    %cst_101 = arith.constant 1.000000e+00 : f32
    %357 = vector.broadcast %cst_101 : f32 to vector<8x128xf32>
    %358 = arith.addf %357, %356 : vector<8x128xf32>
    %359 = arith.divf %357, %358 : vector<8x128xf32>
    %360 = vector.extract_strided_slice %359 {offsets = [0, 0], sizes = [8, 32], strides = [1, 1]} : vector<8x128xf32> to vector<8x32xf32>
    %361 = vector.extract_strided_slice %359 {offsets = [0, 32], sizes = [8, 32], strides = [1, 1]} : vector<8x128xf32> to vector<8x32xf32>
    %362 = vector.extract_strided_slice %359 {offsets = [0, 96], sizes = [8, 32], strides = [1, 1]} : vector<8x128xf32> to vector<8x32xf32>
    %363 = vector.extract_strided_slice %354 {offsets = [0, 64], sizes = [8, 32], strides = [1, 1]} : vector<8x128xf32> to vector<8x32xf32>
    %364 = math.tanh %363 : vector<8x32xf32>
    %365 = arith.mulf %361, %346 : vector<8x32xf32>
    %366 = arith.mulf %360, %364 : vector<8x32xf32>
    %367 = arith.addf %365, %366 : vector<8x32xf32>
    %368 = math.tanh %367 : vector<8x32xf32>
    %369 = arith.mulf %362, %368 : vector<8x32xf32>
    %c8_i32_102 = arith.constant 8 : i32
    %c0_103 = arith.constant 0 : index
    %c0_104 = arith.constant 0 : index
    %370 = vector.load %arg7[%c0_103, %c0_104] : memref<32x128xf32, #tpu.memory_space<vmem>>, vector<32x128xf32>
    %cst_105 = arith.constant dense<0.000000e+00> : vector<8x128xf32>
    %371 = tpu.matmul %369, %370, %cst_105 {dimension_numbers = #tpu.dot_dimension_numbers<[1], [0], [0], [1], [0, 0, 1, 1], [], []>} : vector<8x32xf32>, vector<32x128xf32>, vector<8x128xf32> -> vector<8x128xf32>
    %c0_106 = arith.constant 0 : index
    %c0_107 = arith.constant 0 : index
    %372 = vector.load %arg8[%c0_106, %c0_107] : memref<1x128xf32, #tpu.memory_space<vmem>>, vector<1x128xf32>
    %373 = vector.broadcast %372 : vector<1x128xf32> to vector<8x128xf32>
    %374 = arith.addf %371, %373 : vector<8x128xf32>
    %cst_108 = arith.constant dense<0xFF800000> : vector<8xf32>
    %375 = vector.multi_reduction <maximumf>, %374, %cst_108 [1] : vector<8x128xf32> to vector<8xf32>
    %376 = vector.shape_cast %375 : vector<8xf32> to vector<8x1xf32>
    %377 = vector.broadcast %376 : vector<8x1xf32> to vector<8x128xf32>
    %378 = arith.subf %374, %377 : vector<8x128xf32>
    %379 = math.exp %378 : vector<8x128xf32>
    %cst_109 = arith.constant dense<0.000000e+00> : vector<8xf32>
    %380 = vector.multi_reduction <add>, %379, %cst_109 [1] : vector<8x128xf32> to vector<8xf32>
    %381 = vector.shape_cast %380 : vector<8xf32> to vector<8x1xf32>
    %382 = tpu.reciprocal %381 {approx = true} : vector<8x1xf32> -> vector<8x1xf32>
    %383 = vector.broadcast %382 : vector<8x1xf32> to vector<8x128xf32>
    %384 = arith.mulf %379, %383 : vector<8x128xf32>
    %c0_110 = arith.constant 0 : index
    %c0_111 = arith.constant 0 : index
    %385 = vector.load %arg9[%c0_110, %c0_111] : memref<8x128xf32, #tpu.memory_space<vmem>>, vector<8x128xf32>
    tpu.vector_store %arg9[%c0_110, %c0_111], %384 {strides = array<i32>} : memref<8x128xf32, #tpu.memory_space<vmem>>, vector<8x128xf32>,
    return
  }
}

</mosaic_0001>

<bundles_post_ra>
// kernel: tpu_custom_call.1
= control target key start
LH: loop header
LB: loop body
LE: loop exit
PB: predicated region body
PF: predicated region fallthrough
CT: control target
= control target key end

     0   :  { %14 = vsyncpa [#allocation5], 0  ;;  %s3278_s0 = inlined_call_operand.vmem [shape: f32[64,16], index: 0, kind: input, shape index: {}]   ;;  %s3279_s1 = inlined_call_operand.hbm [shape: f32[16,128], index: 1, kind: input, shape index: {}]   ;;  %s3280_s2 = inlined_call_operand.vmem [shape: f32[32,128], index: 2, kind: input, shape index: {}]   ;;  %s3281_s3 = inlined_call_operand.vmem [shape: f32[32,128], index: 3, kind: input, shape index: {}]   ;;  %s3282_s4 = inlined_call_operand.hbm [shape: f32[32,128], index: 4, kind: input, shape index: {}]   ;;  %s3283_s5 = inlined_call_operand.vmem [shape: f32[1,128], index: 5, kind: input, shape index: {}]   ;;  %s3284_s6 = inlined_call_operand.vmem [shape: f32[1,128], index: 6, kind: input, shape index: {}]   ;;  %s3285_s7 = inlined_call_operand.vmem [shape: f32[32,128], index: 7, kind: input, shape index: {}]   ;;  %s3286_s8 = inlined_call_operand.vmem [shape: f32[1,128], index: 8, kind: input, shape index: {}]   ;;  %s3287_s9 = inlined_call_operand.hbm [shape: f32[8,128], index: 9, kind: output, shape index: {}]  }
   0x1   :  { %15 = vsyncpa [#allocation8], 0 }
   0x2   :  { %16 = vsyncpa [#allocation6], 0  ;;  %s2843_s30 = smov [#allocation4]   ;;  %s2771_s13 = scalar_lea.hbm %s3279_s1, 256 }
   0x3   :  { %s24_s10 = sshll.u32 %s2843_s30, 4  ;;  %p2772_p0 = scmp.ne.s32.totalorder %s3279_s1, %s2771_s13  ;;  %s25_s10 = int_to_ptr.vmem [resolvable:$true] %s24_s10 }
   0x4   :  { %p2775_p1 = scmp.lt.u32.totalorder %s2771_s13, %s3279_s1 }
   0x6   :  { %p2777_p2 = pnand %p2775_p1, %p2772_p0 }
   0x8   :  { %2780 = shalt.err (!%p2777_p2)
}
   0x9   :  { %s2781_s18 = scalar_lea.vmem %s25_s10, 256  ;;  %p2786_p4 = scmp.lt.s32.totalorder %s25_s10, %s25_s10 }
   0xa   :  { %p2782_p3 = scmp.ne.s32.totalorder %s25_s10, %s2781_s18  ;;  %p2787_p5 = scmp.lt.s32.totalorder %s2781_s18, %s2781_s18 }
   0xc   :  { %p2788_p6 = por %p2787_p5, %p2786_p4 }
   0xe   :  { %p2789_p7 = pnand %p2788_p6, %p2782_p3 }
  0x10   :  { %2792 = shalt.err (!%p2789_p7)
}
  0x11   :  { %s2844_s19 = smov 128   ;;  %s2845_s20 = smov 8  }
  0x12   :  { %30 = dma.hbm_to_vmem [thread:$0]  %s3279_s1, 256, %s25_s10, [#allocation5], %s2844_s19, %s2844_s19, %s2845_s20  }
  0x13   :  { %s2846_s23 = smov [#allocation7]   ;;  %s2793_s27 = scalar_lea.hbm %s3282_s4, 512 }
  0x14   :  { %s40_s24 = sshll.u32 %s2846_s23, 4  ;;  %p2794_p8 = scmp.ne.s32.totalorder %s3282_s4, %s2793_s27  ;;  %s41_s24 = int_to_ptr.vmem [resolvable:$true] %s40_s24 }
  0x15   :  { %p2797_p9 = scmp.lt.u32.totalorder %s2793_s27, %s3282_s4 }
  0x17   :  { %p2799_p10 = pnand %p2797_p9, %p2794_p8 }
  0x19   :  { %2802 = shalt.err (!%p2799_p10)
}
  0x1a   :  { %s2803_s12 = scalar_lea.vmem %s41_s24, 512  ;;  %p2808_p12 = scmp.lt.s32.totalorder %s41_s24, %s41_s24 }
  0x1b   :  { %p2804_p11 = scmp.ne.s32.totalorder %s41_s24, %s2803_s12  ;;  %p2809_p13 = scmp.lt.s32.totalorder %s2803_s12, %s2803_s12 }
  0x1d   :  { %p2810_p0 = por %p2809_p13, %p2808_p12 }
  0x1f   :  { %p2811_p1 = pnand %p2810_p0, %p2804_p11 }
  0x21   :  { %2814 = shalt.err (!%p2811_p1)
}
  0x22   :  { %46 = dma.hbm_to_vmem [thread:$0]  %s3282_s4, 512, %s41_s24, [#allocation8], %s2844_s19, %s2844_s19, %s2845_s20  }
  0x23   :  { %2837 = dma.done.wait [#allocation5], 256  }
  0x24   :  { %2838 = vsyncadd [#allocation5], 4294967040 }
  0x25   :  { %2839 = dma.done.wait [#allocation8], 512  }
  0x26   :  { %2840 = vsyncadd [#allocation8], 4294966784  ;;  %v2847_v0 = vmov 0.0|0.0   ;;  %vm2848_vm0 = vmmov 0   ;;  %v2849_v1 = vmov 0.0   ;;  %vm78_vm1 = vcmask 130048  }
  0x27   :  { %2519 = vmatprep.subr.bf16.mxu1 %v2847_v0  ;;  %2316 = vmatprep.mubr.msk.f32.mxu1 %vm2848_vm0, %v2849_v1  ;;  %v69_v2 = vld [vmem:[#allocation4] sm:$0xff]  ;;  %v70_v3 = vld [vmem:[#allocation4 + $0x8] sm:$0xff]  ;;  %v218_v9 = vld [vmem:[%s3281_s3 + $0x10] sm:$0xff]  ;;  %s2850_s25 = smov 64   ;;  %vm221_vm2 = vcmask 261120  }
  0x28   :  { %v216_v4 = vld [vmem:[%s3281_s3] sm:$0xff]  ;;  %v2515_v5 = vpack.c.bf16 %v70_v3, %v69_v2  ;;  %v217_v6 = vld [vmem:[%s3281_s3 + $0x8] sm:$0xff]  ;;  %v219_v10 = vld [vmem:[%s3281_s3 + $0x18] sm:$0xff] }
  0x29   :  { %v61_v7 = vld [vmem:[%s3278_s0] sm:$0xff]  ;;  %v2939_v8 = vpack.c.bf16 %v217_v6, %v216_v4  ;;  %v62_v11 = vld [vmem:[%s3278_s0 + $0x8] sm:$0xff]  ;;  %v2952_v12 = vpack.c.bf16 %v219_v10, %v218_v9  ;;  %v63_v48 = vld [vmem:[%s3278_s0 + $0x10] sm:$0xff] }
  0x2a   :  { %2296 = vmatprep.mubr.msk.f32.mxu0 %vm78_vm1, %v61_v7  ;;  %2516 = vmatprep.subr.bf16.mxu0 %v2515_v5  ;;  %v2973_v13 = vld [vmem:[%s3283_s5] ss:$0 sm:$0xff]  ;;  %s2851_s5 = smov 32   ;;  %v64_v49 = vld [vmem:[%s3278_s0 + $0x18] sm:$0xff]  ;;  %v66_v51 = vld [vmem:[%s3278_s0 + $0x28] sm:$0xff] }
  0x2b   :  { %2521 = vmatpush3.bf16.msra.mxu1 %v2939_v8  ;;  %2518 = vmatpush3.bf16.msra.mxu0 %v2515_v5  ;;  %v65_v50 = vld [vmem:[%s3278_s0 + $0x20] sm:$0xff]  ;;  %v67_v52 = vld [vmem:[%s3278_s0 + $0x30] sm:$0xff]  ;;  %v68_v53 = vld [vmem:[%s3278_s0 + $0x38] sm:$0xff] }
  0x2c   :  { %2522 = vmatprep.subr.bf16.mxu1 %v2847_v0  ;;  %2531 = vmatprep.subr.bf16.mxu0 %v2847_v0 }
  0x2e   :  { %2297 = vmatmul.mubr.msk.f32.vlgmr.msra.gmra.mrb[0].mxu0 %vm78_vm1, %v62_v11 }
  0x2f   :  { %2524 = vmatpush3.bf16.msra.mxu1 %v2952_v12  ;;  %2533 = vmatpush3.bf16.msra.mxu0 %v2939_v8 }
  0x30   :  { %2525 = vmatprep.subr.bf16.mxu1 %v2847_v0  ;;  %2534 = vmatprep.subr.bf16.mxu0 %v2847_v0 }
  0x31   :  { %2299 = vmatprep.mubr.msk.f32.mxu0 %vm78_vm1, %v63_v48 }
  0x32   :  { %2317 = vmatmul.mubr.f32.vlgmr.msra.gmra.mrb[0].mxu1 %v2849_v1  ;;  %2300 = vmatmul.mubr.msk.f32.gmra.mrb[2].mxu0 %vm78_vm1, %v64_v49 }
  0x33   :  { %2527 = vmatpush3.bf16.msra.mxu1 %v2939_v8  ;;  %2327 = vmatprep.mubr.msk.f32.mxu1 %vm2848_vm0, %v2849_v1 }
  0x34   :  { %2528 = vmatprep.subr.bf16.mxu1 %v2847_v0  ;;  %2536 = vmatpush3.bf16.msra.mxu0 %v2952_v12 }
  0x35   :  { %2543 = vmatprep.subr.bf16.mxu0 %v2847_v0  ;;  %2302 = vmatprep.mubr.msk.f32.mxu0 %vm78_vm1, %v65_v50 }
  0x36   :  { %2303 = vmatmul.mubr.msk.f32.gmra.mrb[4].mxu0 %vm78_vm1, %v66_v51 }
  0x37   :  { %2530 = vmatpush3.bf16.msra.mxu1 %v2952_v12  ;;  %2305 = vmatprep.mubr.msk.f32.mxu0 %vm78_vm1, %v67_v52 }
  0x38   :  { %2537 = vmatprep.subr.bf16.mxu1 %v2847_v0 }
  0x3a   :  { %2306 = vmatmul.mubr.msk.f32.gmra.mrb[6].mxu0 %vm78_vm1, %v68_v53 }
  0x3b   :  { %2338 = vmatprep.mubr.msk.f32.mxu0 %vm2848_vm0, %v2849_v1 }
 0x101   :  { %v2298_v14 = vpop.f32.mrb[0].mxu0 }
 0x102   :  { %v169_v15 = vpop.f32.mrb[1].mxu0  ;;  %v175_v34 = vadd.f32 %v2298_v14, %v2973_v13 }
 0x103   :  { %v170_v16 = vadd.f32 %v2973_v13, %v169_v15 }
 0x105   :  { %v291_v17 = vpop.f32.mrb[0].mxu1  ;;  %v2301_v57 = vpop.f32.mrb[2].mxu0 }
 0x106   :  { %v295_v18 = vadd.f32 %v291_v17, %v170_v16  ;;  %v2318_v19 = vpop.f32.mrb[1].mxu1  ;;  %v179_v58 = vpop.f32.mrb[3].mxu0 }
 0x107   :  { %v180_v2 = vadd.f32 %v2973_v13, %v179_v58 }
 0x108   :  { %2639 = vtanh.f32 %v295_v18  ;;  %v2144_v21 = vmul.f32 -1.442695, %v295_v18 }
 0x109   :  { %v3019_v59 = vpop.f32.mrb[4].mxu0 }
 0x10a   :  { %2641 = vpow2.f32 %v2144_v21  ;;  %v3021_v60 = vpop.f32.mrb[5].mxu0 }
 0x10d   :  { %v3023_v61 = vpop.f32.mrb[6].mxu0 }
 0x10e   :  { %v3025_v62 = vpop.f32.mrb[7].mxu0 }
 0x112   :  { %v2640_v20 = vpop.eup %2639 }
 0x113   :  { %305 = vrot.lane.b32.xlu0 %v2640_v20, %s2850_s25 }
 0x114   :  { %v2642_v22 = vpop.eup %2641 }
 0x115   :  { %v299_v23 = vadd.f32 1.0, %v2642_v22 }
 0x117   :  { %2643 = vrcp.f32 %v299_v23  ;;  %v185_v23 = vadd.f32 %v2301_v57, %v2973_v13 }
 0x121   :  { %v2644_v24 = vpop.eup %2643 }
 0x122   :  { %v303_v27 = vmul.f32 0.0, %v2644_v24 }
 0x185   :  { %v306_v25 = vpop.permute.xlu0 %305 }
 0x186   :  { %v308_v26 = vmul.f32 %v2644_v24, %v306_v25 }
 0x188   :  { %310 = vrot.lane.b32.xlu0 %v308_v26, %s2851_s5 }
 0x1fa   :  { %v311_v28 = vpop.permute.xlu0 %310 }
 0x1fb   :  { %v313_v29 = vadd.f32 %v311_v28, %v303_v27 }
 0x1fd   :  { %2645 = vtanh.f32 %v313_v29 }
 0x207   :  { %v2646_v30 = vpop.eup %2645 }
 0x208   :  { %316 = vrot.lane.b32.xlu1 %v2646_v30, %s2850_s25 }
 0x27a   :  { %v317_v31 = vpop.permute.xlu1 %316 }
 0x27b   :  { %v319_v32 = vmul.f32 %v2644_v24, %v317_v31 }
 0x27d   :  { %321 = vrot.lane.b32.xlu1 %v319_v32, %s2851_s5 }
 0x2ef   :  { %v322_v33 = vpop.permute.xlu1 %321 }
 0x2f0   :  { %324 = vst.msk [vmem:[#allocation3] sm:$0xff] %vm221_vm2, %v322_v33  ;;  %2328 = vmatmul.mubr.msk.f32.vlgmr.msra.gmra.mrb[2].mxu1 %vm221_vm2, %v322_v33 }
 0x2f1   :  { %2539 = vmatpush3.bf16.msra.mxu1 %v2939_v8  ;;  %2349 = vmatprep.mubr.msk.f32.mxu1 %vm2848_vm0, %v2849_v1 }
 0x2f2   :  { %2540 = vmatprep.subr.bf16.mxu1 %v2847_v0 }
 0x2f5   :  { %2542 = vmatpush3.bf16.msra.mxu1 %v2952_v12 }
 0x2f6   :  { %2549 = vmatprep.subr.bf16.mxu1 %v2847_v0 }
 0x3c3   :  { %v395_v35 = vpop.f32.mrb[2].mxu1 }
 0x3c4   :  { %v399_v36 = vadd.f32 %v395_v35, %v175_v34  ;;  %v2329_v37 = vpop.f32.mrb[3].mxu1 }
 0x3c6   :  { %2647 = vtanh.f32 %v399_v36  ;;  %v2146_v39 = vmul.f32 -1.442695, %v399_v36 }
 0x3c8   :  { %2649 = vpow2.f32 %v2146_v39 }
 0x3d0   :  { %v2648_v38 = vpop.eup %2647 }
 0x3d1   :  { %409 = vrot.lane.b32.xlu0 %v2648_v38, %s2850_s25 }
 0x3d2   :  { %v2650_v40 = vpop.eup %2649 }
 0x3d3   :  { %v403_v41 = vadd.f32 1.0, %v2650_v40 }
 0x3d5   :  { %2651 = vrcp.f32 %v403_v41  ;;  %v190_v41 = vadd.f32 %v2973_v13, %v3021_v60  ;;  %v195_v60 = vadd.f32 %v3019_v59, %v2973_v13 }
 0x3df   :  { %v2652_v42 = vpop.eup %2651 }
 0x3e0   :  { %v407_v45 = vmul.f32 %v2652_v42, %v313_v29 }
 0x443   :  { %v410_v43 = vpop.permute.xlu0 %409 }
 0x444   :  { %v412_v44 = vmul.f32 %v2652_v42, %v410_v43 }
 0x446   :  { %414 = vrot.lane.b32.xlu1 %v412_v44, %s2851_s5 }
 0x4b8   :  { %v415_v46 = vpop.permute.xlu1 %414 }
 0x4b9   :  { %v417_v47 = vadd.f32 %v415_v46, %v407_v45 }
 0x4bb   :  { %2653 = vtanh.f32 %v417_v47 }
 0x4c5   :  { %v2654_v54 = vpop.eup %2653 }
 0x4c6   :  { %420 = vrot.lane.b32.xlu0 %v2654_v54, %s2850_s25 }
 0x538   :  { %v421_v55 = vpop.permute.xlu0 %420 }
 0x539   :  { %v423_v56 = vmul.f32 %v2652_v42, %v421_v55 }
 0x53b   :  { %425 = vrot.lane.b32.xlu1 %v423_v56, %s2851_s5 }
 0x5ad   :  { %v426_v63 = vpop.permute.xlu1 %425 }
 0x5ae   :  { %429 = vst.msk [vmem:[#allocation3 + $0x8] sm:$0xff] %vm221_vm2, %v426_v63  ;;  %2339 = vmatmul.mubr.msk.f32.vlgmr.msra.gmra.mrb[8].mxu0 %vm221_vm2, %v426_v63 }
 0x5af   :  { %2545 = vmatpush3.bf16.msra.mxu0 %v2939_v8  ;;  %2360 = vmatprep.mubr.msk.f32.mxu0 %vm2848_vm0, %v2849_v1 }
 0x5b0   :  { %2546 = vmatprep.subr.bf16.mxu0 %v2847_v0 }
 0x5b3   :  { %2548 = vmatpush3.bf16.msra.mxu0 %v2952_v12 }
 0x5b4   :  { %2555 = vmatprep.subr.bf16.mxu0 %v2847_v0 }
 0x681   :  { %v500_v3 = vpop.f32.mrb[8].mxu0 }
 0x682   :  { %v504_v4 = vadd.f32 %v500_v3, %v180_v2  ;;  %v2340_v5 = vpop.f32.mrb[9].mxu0 }
 0x684   :  { %2655 = vtanh.f32 %v504_v4  ;;  %v2148_v7 = vmul.f32 -1.442695, %v504_v4 }
 0x686   :  { %2657 = vpow2.f32 %v2148_v7 }
 0x68e   :  { %v2656_v6 = vpop.eup %2655 }
 0x68f   :  { %514 = vrot.lane.b32.xlu0 %v2656_v6, %s2850_s25 }
 0x690   :  { %v2658_v9 = vpop.eup %2657 }
 0x691   :  { %v508_v10 = vadd.f32 1.0, %v2658_v9 }
 0x693   :  { %2659 = vrcp.f32 %v508_v10 }
 0x69d   :  { %v2660_v11 = vpop.eup %2659 }
 0x69e   :  { %v512_v16 = vmul.f32 %v2660_v11, %v417_v47 }
 0x701   :  { %v515_v14 = vpop.permute.xlu0 %514 }
 0x702   :  { %v517_v15 = vmul.f32 %v2660_v11, %v515_v14  ;;  %v1068_v14 = vld [vmem:[%s3280_s2] sm:$0xff] }
 0x704   :  { %519 = vrot.lane.b32.xlu1 %v517_v15, %s2851_s5  ;;  %v1069_v15 = vld [vmem:[%s3280_s2 + $0x8] sm:$0xff] }
 0x776   :  { %v520_v17 = vpop.permute.xlu1 %519 }
 0x777   :  { %v522_v18 = vadd.f32 %v520_v17, %v512_v16  ;;  %v2567_v16 = vpack.c.bf16 %v1069_v15, %v1068_v14 }
 0x779   :  { %2661 = vtanh.f32 %v522_v18 }
 0x783   :  { %v2662_v19 = vpop.eup %2661 }
 0x784   :  { %525 = vrot.lane.b32.xlu0 %v2662_v19, %s2850_s25 }
 0x7f6   :  { %v526_v20 = vpop.permute.xlu0 %525 }
 0x7f7   :  { %v528_v21 = vmul.f32 %v2660_v11, %v526_v20  ;;  %v1070_v20 = vld [vmem:[%s3280_s2 + $0x10] sm:$0xff] }
 0x7f9   :  { %530 = vrot.lane.b32.xlu1 %v528_v21, %s2851_s5  ;;  %v1071_v21 = vld [vmem:[%s3280_s2 + $0x18] sm:$0xff] }
 0x86b   :  { %v531_v22 = vpop.permute.xlu1 %530 }
 0x86c   :  { %534 = vst.msk [vmem:[#allocation3 + $0x10] sm:$0xff] %vm221_vm2, %v531_v22  ;;  %2350 = vmatmul.mubr.msk.f32.vlgmr.msra.gmra.mrb[4].mxu1 %vm221_vm2, %v531_v22  ;;  %v2571_v22 = vpack.c.bf16 %v1071_v21, %v1070_v20 }
 0x86d   :  { %2551 = vmatpush3.bf16.msra.mxu1 %v2939_v8  ;;  %2371 = vmatprep.mubr.msk.f32.mxu1 %vm2848_vm0, %v2849_v1 }
 0x86e   :  { %2552 = vmatprep.subr.bf16.mxu1 %v2847_v0 }
 0x871   :  { %2554 = vmatpush3.bf16.msra.mxu1 %v2952_v12 }
 0x872   :  { %2561 = vmatprep.subr.bf16.mxu1 %v2847_v0 }
 0x93f   :  { %v605_v24 = vpop.f32.mrb[4].mxu1 }
 0x940   :  { %v609_v25 = vadd.f32 %v605_v24, %v185_v23  ;;  %v2351_v26 = vpop.f32.mrb[5].mxu1  ;;  %v1060_v24 = vld [vmem:[#allocation3] sm:$0xff] }
 0x941   :  { %v1062_v26 = vld [vmem:[#allocation3 + $0x10] sm:$0xff] }
 0x942   :  { %2663 = vtanh.f32 %v609_v25  ;;  %v2150_v28 = vmul.f32 -1.442695, %v609_v25  ;;  %v1061_v25 = vld [vmem:[#allocation3 + $0x8] sm:$0xff] }
 0x944   :  { %2665 = vpow2.f32 %v2150_v28 }
 0x94c   :  { %v2664_v27 = vpop.eup %2663 }
 0x94d   :  { %619 = vrot.lane.b32.xlu0 %v2664_v27, %s2850_s25 }
 0x94e   :  { %v2666_v29 = vpop.eup %2665 }
 0x94f   :  { %v613_v30 = vadd.f32 1.0, %v2666_v29 }
 0x951   :  { %2667 = vrcp.f32 %v613_v30  ;;  %v200_v30 = vadd.f32 %v2973_v13, %v3025_v62 }
 0x95b   :  { %v2668_v31 = vpop.eup %2667 }
 0x95c   :  { %v617_v34 = vmul.f32 %v2668_v31, %v522_v18 }
 0x9bf   :  { %v620_v32 = vpop.permute.xlu0 %619 }
 0x9c0   :  { %v622_v33 = vmul.f32 %v2668_v31, %v620_v32 }
 0x9c2   :  { %624 = vrot.lane.b32.xlu1 %v622_v33, %s2851_s5 }
 0xa34   :  { %v625_v35 = vpop.permute.xlu1 %624 }
 0xa35   :  { %v627_v36 = vadd.f32 %v625_v35, %v617_v34 }
 0xa37   :  { %2669 = vtanh.f32 %v627_v36 }
 0xa41   :  { %v2670_v37 = vpop.eup %2669 }
 0xa42   :  { %630 = vrot.lane.b32.xlu0 %v2670_v37, %s2850_s25 }
 0xab4   :  { %v631_v38 = vpop.permute.xlu0 %630 }
 0xab5   :  { %v633_v39 = vmul.f32 %v2668_v31, %v631_v38 }
 0xab7   :  { %635 = vrot.lane.b32.xlu1 %v633_v39, %s2851_s5 }
 0xb29   :  { %v636_v40 = vpop.permute.xlu1 %635 }
 0xb2a   :  { %639 = vst.msk [vmem:[#allocation3 + $0x18] sm:$0xff] %vm221_vm2, %v636_v40  ;;  %2361 = vmatmul.mubr.msk.f32.vlgmr.msra.gmra.mrb[10].mxu0 %vm221_vm2, %v636_v40 }
 0xb2b   :  { %2557 = vmatpush3.bf16.msra.mxu0 %v2939_v8  ;;  %2382 = vmatprep.mubr.msk.f32.mxu0 %vm2848_vm0, %v2849_v1 }
 0xb2c   :  { %2558 = vmatprep.subr.bf16.mxu0 %v2847_v0 }
 0xb2f   :  { %2560 = vmatpush3.bf16.msra.mxu0 %v2952_v12 }
 0xb30   :  { %2568 = vmatprep.subr.bf16.mxu0 %v2567_v16 }
 0xb31   :  { %v1063_v27 = vld [vmem:[#allocation3 + $0x18] sm:$0xff] }
 0xbfd   :  { %v710_v42 = vpop.f32.mrb[10].mxu0 }
 0xbfe   :  { %v714_v43 = vadd.f32 %v710_v42, %v190_v41  ;;  %v2362_v44 = vpop.f32.mrb[11].mxu0 }
 0xc00   :  { %2671 = vtanh.f32 %v714_v43  ;;  %v2152_v46 = vmul.f32 -1.442695, %v714_v43 }
 0xc02   :  { %2673 = vpow2.f32 %v2152_v46 }
 0xc0a   :  { %v2672_v45 = vpop.eup %2671 }
 0xc0b   :  { %724 = vrot.lane.b32.xlu0 %v2672_v45, %s2850_s25 }
 0xc0c   :  { %v2674_v47 = vpop.eup %2673 }
 0xc0d   :  { %v718_v48 = vadd.f32 1.0, %v2674_v47 }
 0xc0f   :  { %2675 = vrcp.f32 %v718_v48 }
 0xc19   :  { %v2676_v49 = vpop.eup %2675 }
 0xc1a   :  { %v722_v52 = vmul.f32 %v2676_v49, %v627_v36 }
 0xc7d   :  { %v725_v50 = vpop.permute.xlu0 %724 }
 0xc7e   :  { %v727_v51 = vmul.f32 %v2676_v49, %v725_v50  ;;  %v1216_v50 = vld [vmem:[#allocation7] sm:$0xff] }
 0xc80   :  { %729 = vrot.lane.b32.xlu1 %v727_v51, %s2851_s5  ;;  %v1217_v51 = vld [vmem:[#allocation7 + $0x8] sm:$0xff] }
 0xcf2   :  { %v730_v53 = vpop.permute.xlu1 %729 }
 0xcf3   :  { %v732_v54 = vadd.f32 %v730_v53, %v722_v52  ;;  %v3119_v52 = vpack.c.bf16 %v1217_v51, %v1216_v50  ;;  %v1218_v53 = vld [vmem:[#allocation7 + $0x10] sm:$0xff] }
 0xcf5   :  { %2677 = vtanh.f32 %v732_v54 }
 0xcff   :  { %v2678_v55 = vpop.eup %2677 }
 0xd00   :  { %735 = vrot.lane.b32.xlu0 %v2678_v55, %s2850_s25 }
 0xd72   :  { %v736_v56 = vpop.permute.xlu0 %735 }
 0xd73   :  { %v738_v57 = vmul.f32 %v2676_v49, %v736_v56 }
 0xd75   :  { %740 = vrot.lane.b32.xlu1 %v738_v57, %s2851_s5 }
 0xde7   :  { %v741_v58 = vpop.permute.xlu1 %740 }
 0xde8   :  { %744 = vst.msk [vmem:[#allocation3 + $0x20] sm:$0xff] %vm221_vm2, %v741_v58  ;;  %2372 = vmatmul.mubr.msk.f32.vlgmr.msra.gmra.mrb[6].mxu1 %vm221_vm2, %v741_v58 }
 0xde9   :  { %2563 = vmatpush3.bf16.msra.mxu1 %v2939_v8  ;;  %2393 = vmatprep.mubr.msk.f32.mxu1 %vm2848_vm0, %v2849_v1 }
 0xdea   :  { %2564 = vmatprep.subr.bf16.mxu1 %v2847_v0 }
 0xded   :  { %2566 = vmatpush3.bf16.msra.mxu1 %v2952_v12 }
 0xdee   :  { %2575 = vmatprep.subr.bf16.mxu1 %v2847_v0 }
 0xdef   :  { %v1064_v28 = vld [vmem:[#allocation3 + $0x20] sm:$0xff] }
 0xebb   :  { %v815_v63 = vpop.f32.mrb[6].mxu1 }
 0xebc   :  { %v819_v2 = vadd.f32 %v815_v63, %v195_v60  ;;  %v2373_v3 = vpop.f32.mrb[7].mxu1  ;;  %v205_v63 = vadd.f32 %v3023_v61, %v2973_v13 }
 0xebe   :  { %2679 = vtanh.f32 %v819_v2  ;;  %v2154_v8 = vmul.f32 -1.442695, %v819_v2 }
 0xec0   :  { %2681 = vpow2.f32 %v2154_v8  ;;  %v3149_v8 = vld [vmem:[%s3284_s6] ss:$0 sm:$0xff] }
 0xec8   :  { %v2680_v4 = vpop.eup %2679 }
 0xec9   :  { %829 = vrot.lane.b32.xlu0 %v2680_v4, %s2850_s25 }
 0xeca   :  { %v2682_v5 = vpop.eup %2681 }
 0xecb   :  { %v823_v6 = vadd.f32 1.0, %v2682_v5 }
 0xecd   :  { %2683 = vrcp.f32 %v823_v6 }
 0xed7   :  { %v2684_v7 = vpop.eup %2683 }
 0xed8   :  { %v827_v10 = vmul.f32 %v2684_v7, %v732_v54  ;;  %v1219_v54 = vld [vmem:[#allocation7 + $0x18] sm:$0xff] }
 0xed9   :  { %v3123_v55 = vpack.c.bf16 %v1219_v54, %v1218_v53 }
 0xf3b   :  { %v830_v9 = vpop.permute.xlu0 %829 }
 0xf3c   :  { %v832_v12 = vmul.f32 %v2684_v7, %v830_v9 }
 0xf3e   :  { %834 = vrot.lane.b32.xlu1 %v832_v12, %s2851_s5 }
 0xfb0   :  { %v835_v11 = vpop.permute.xlu1 %834 }
 0xfb1   :  { %v837_v59 = vadd.f32 %v835_v11, %v827_v10 }
 0xfb3   :  { %2685 = vtanh.f32 %v837_v59 }
 0xfbd   :  { %v2686_v17 = vpop.eup %2685 }
 0xfbe   :  { %840 = vrot.lane.b32.xlu0 %v2686_v17, %s2850_s25 }
0x1030   :  { %v841_v18 = vpop.permute.xlu0 %840 }
0x1031   :  { %v843_v19 = vmul.f32 %v2684_v7, %v841_v18 }
0x1033   :  { %845 = vrot.lane.b32.xlu1 %v843_v19, %s2851_s5 }
0x10a5   :  { %v846_v23 = vpop.permute.xlu1 %845 }
0x10a6   :  { %849 = vst.msk [vmem:[#allocation3 + $0x28] sm:$0xff] %vm221_vm2, %v846_v23  ;;  %2383 = vmatmul.mubr.msk.f32.vlgmr.msra.gmra.mrb[12].mxu0 %vm221_vm2, %v846_v23 }
0x10a7   :  { %2570 = vmatpush3.bf16.msra.mxu0 %v2567_v16  ;;  %2404 = vmatprep.mubr.msk.f32.mxu0 %vm221_vm2, %v1060_v24 }
0x10a8   :  { %2572 = vmatprep.subr.bf16.mxu0 %v2571_v22 }
0x10ab   :  { %2574 = vmatpush3.bf16.msra.mxu0 %v2571_v22 }
0x10ac   :  { %2587 = vmatprep.subr.bf16.mxu0 %v2847_v0 }
0x10ad   :  { %v1065_v29 = vld [vmem:[#allocation3 + $0x28] sm:$0xff] }
0x10ae   :  { %2405 = vmatmul.mubr.msk.f32.vlgmr.msra.gmra.mrb[14].mxu0 %vm221_vm2, %v1061_v25 }
0x10af   :  { %2407 = vmatprep.mubr.msk.f32.mxu0 %vm221_vm2, %v1062_v26  ;;  %2589 = vmatpush3.bf16.msra.mxu0 %v3119_v52 }
0x10b0   :  { %2590 = vmatprep.subr.bf16.mxu0 %v2847_v0 }
0x10b2   :  { %2408 = vmatmul.mubr.msk.f32.gmra.mrb[16].mxu0 %vm221_vm2, %v1063_v27 }
0x10b3   :  { %2410 = vmatprep.mubr.msk.f32.mxu0 %vm221_vm2, %v1064_v28  ;;  %2592 = vmatpush3.bf16.msra.mxu0 %v3123_v55 }
0x10b4   :  { %2599 = vmatprep.subr.bf16.mxu0 %v2847_v0 }
0x10b6   :  { %2411 = vmatmul.mubr.msk.f32.gmra.mrb[18].mxu0 %vm221_vm2, %v1065_v29 }
0x1179   :  { %v920_v31 = vpop.f32.mrb[12].mxu0 }
0x117a   :  { %v924_v32 = vadd.f32 %v920_v31, %v200_v30  ;;  %v2384_v33 = vpop.f32.mrb[13].mxu0 }
0x117c   :  { %2687 = vtanh.f32 %v924_v32  ;;  %v2156_v41 = vmul.f32 -1.442695, %v924_v32 }
0x117e   :  { %2689 = vpow2.f32 %v2156_v41 }
0x1181   :  { %v3103_v34 = vpop.f32.mrb[14].mxu0 }
0x1182   :  { %v1169_v35 = vpop.f32.mrb[15].mxu0 }
0x1183   :  { %v1170_v5 = vadd.f32 %v3149_v8, %v1169_v35 }
0x1185   :  { %v3105_v36 = vpop.f32.mrb[16].mxu0 }
0x1186   :  { %v2688_v37 = vpop.eup %2687  ;;  %v3107_v38 = vpop.f32.mrb[17].mxu0 }
0x1187   :  { %934 = vrot.lane.b32.xlu0 %v2688_v37, %s2850_s25  ;;  %v1175_v37 = vadd.f32 %v3103_v34, %v3149_v8 }
0x1188   :  { %v2690_v62 = vpop.eup %2689 }
0x1189   :  { %v3110_v39 = vpop.f32.mrb[18].mxu0  ;;  %v928_v42 = vadd.f32 1.0, %v2690_v62 }
0x118a   :  { %v3112_v40 = vpop.f32.mrb[19].mxu0 }
0x118b   :  { %2691 = vrcp.f32 %v928_v42 }
0x1195   :  { %v2692_v43 = vpop.eup %2691 }
0x1196   :  { %v932_v46 = vmul.f32 %v2692_v43, %v837_v59 }
0x11f9   :  { %v935_v44 = vpop.permute.xlu0 %934 }
0x11fa   :  { %v937_v45 = vmul.f32 %v2692_v43, %v935_v44 }
0x11fc   :  { %939 = vrot.lane.b32.xlu1 %v937_v45, %s2851_s5 }
0x126e   :  { %v940_v47 = vpop.permute.xlu1 %939 }
0x126f   :  { %v3115_v48 = vadd.f32 %v940_v47, %v932_v46 }
0x1271   :  { %2693 = vtanh.f32 %v3115_v48 }
0x127b   :  { %v2694_v49 = vpop.eup %2693 }
0x127c   :  { %945 = vrot.lane.b32.xlu0 %v2694_v49, %s2850_s25 }
0x12ee   :  { %v946_v56 = vpop.permute.xlu0 %945 }
0x12ef   :  { %v948_v57 = vmul.f32 %v2692_v43, %v946_v56 }
0x12f1   :  { %950 = vrot.lane.b32.xlu1 %v948_v57, %s2851_s5 }
0x1363   :  { %v951_v58 = vpop.permute.xlu1 %950 }
0x1364   :  { %954 = vst.msk [vmem:[#allocation3 + $0x30] sm:$0xff] %vm221_vm2, %v951_v58  ;;  %2394 = vmatmul.mubr.msk.f32.vlgmr.msra.gmra.mrb[8].mxu1 %vm221_vm2, %v951_v58 }
0x1365   :  { %2577 = vmatpush3.bf16.msra.mxu1 %v3119_v52  ;;  %2424 = vmatprep.mubr.msk.f32.mxu1 %vm2848_vm0, %v2849_v1 }
0x1366   :  { %2578 = vmatprep.subr.bf16.mxu1 %v2847_v0 }
0x1369   :  { %2580 = vmatpush3.bf16.msra.mxu1 %v3123_v55 }
0x136a   :  { %2581 = vmatprep.subr.bf16.mxu1 %v2847_v0 }
0x136b   :  { %v1066_v60 = vld [vmem:[#allocation3 + $0x30] sm:$0xff] }
0x136c   :  { %2425 = vmatmul.mubr.f32.vlgmr.msra.gmra.mrb[10].mxu1 %v2849_v1  ;;  %2413 = vmatprep.mubr.msk.f32.mxu0 %vm221_vm2, %v1066_v60 }
0x136d   :  { %2583 = vmatpush3.bf16.msra.mxu1 %v3119_v52  ;;  %2435 = vmatprep.mubr.msk.f32.mxu1 %vm2848_vm0, %v2849_v1 }
0x136e   :  { %2584 = vmatprep.subr.bf16.mxu1 %v2847_v0 }
0x1371   :  { %2586 = vmatpush3.bf16.msra.mxu1 %v3123_v55 }
0x1372   :  { %2593 = vmatprep.subr.bf16.mxu1 %v2847_v0 }
0x1437   :  { %v1025_v2 = vpop.f32.mrb[8].mxu1 }
0x1438   :  { %v1029_v3 = vadd.f32 %v1025_v2, %v205_v63  ;;  %v2395_v4 = vpop.f32.mrb[9].mxu1 }
0x143a   :  { %v2158_v20 = vmul.f32 -1.442695, %v1029_v3 }
0x143f   :  { %v1287_v6 = vpop.f32.mrb[10].mxu1 }
0x1440   :  { %v1291_v7 = vadd.f32 %v1287_v6, %v1170_v5  ;;  %v2426_v9 = vpop.f32.mrb[11].mxu1 }
0x1442   :  { %2695 = vtanh.f32 %v1291_v7  ;;  %v2168_v10 = vmul.f32 -1.442695, %v1291_v7 }
0x1444   :  { %2697 = vpow2.f32 %v2168_v10 }
0x144c   :  { %v2696_v12 = vpop.eup %2695 }
0x144d   :  { %1301 = vrot.lane.b32.xlu0 %v2696_v12, %s2850_s25 }
0x144e   :  { %v2698_v13 = vpop.eup %2697 }
0x144f   :  { %v1295_v61 = vadd.f32 1.0, %v2698_v13 }
0x1451   :  { %2699 = vrcp.f32 %v1295_v61 }
0x145b   :  { %v2700_v11 = vpop.eup %2699 }
0x145c   :  { %v1299_v15 = vmul.f32 0.0, %v2700_v11 }
0x14bf   :  { %v1302_v59 = vpop.permute.xlu0 %1301 }
0x14c0   :  { %v1304_v14 = vmul.f32 %v2700_v11, %v1302_v59 }
0x14c2   :  { %1306 = vrot.lane.b32.xlu1 %v1304_v14, %s2851_s5 }
0x1534   :  { %v1307_v16 = vpop.permute.xlu1 %1306 }
0x1535   :  { %v1309_v17 = vadd.f32 %v1307_v16, %v1299_v15 }
0x1537   :  { %2701 = vtanh.f32 %v1309_v17 }
0x1538   :  { %2703 = vtanh.f32 %v1029_v3  ;;  %v1180_v3 = vadd.f32 %v3149_v8, %v3107_v38 }
0x1539   :  { %2705 = vpow2.f32 %v2158_v20 }
0x1541   :  { %v2702_v18 = vpop.eup %2701 }
0x1542   :  { %1312 = vrot.lane.b32.xlu0 %v2702_v18, %s2850_s25  ;;  %v2704_v19 = vpop.eup %2703 }
0x1543   :  { %v2706_v21 = vpop.eup %2705 }
0x1544   :  { %v1033_v22 = vadd.f32 1.0, %v2706_v21 }
0x1546   :  { %1039 = vrot.lane.b32.xlu0 %v2704_v19, %s2850_s25  ;;  %2707 = vrcp.f32 %v1033_v22  ;;  %v1185_v19 = vadd.f32 %v3105_v36, %v3149_v8 }
0x1550   :  { %v2708_v25 = vpop.eup %2707 }
0x1551   :  { %v1037_v29 = vmul.f32 %v2708_v25, %v3115_v48 }
0x15b4   :  { %v1313_v23 = vpop.permute.xlu0 %1312 }
0x15b5   :  { %v1315_v24 = vmul.f32 %v2700_v11, %v1313_v23 }
0x15b7   :  { %1318 = vrot.lane.b32.xlu1 %v1315_v24, %s2851_s5 }
0x15b8   :  { %v1040_v26 = vpop.permute.xlu0 %1039 }
0x15b9   :  { %v1042_v27 = vmul.f32 %v2708_v25, %v1040_v26 }
0x15bb   :  { %1044 = vrot.lane.b32.xlu0 %v1042_v27, %s2851_s5 }
0x1629   :  { %v1319_v28 = vpop.permute.xlu1 %1318 }
0x162a   :  { %2436 = vmatmul.mubr.msk.f32.vlgmr.msra.gmra.mrb[12].mxu1 %vm221_vm2, %v1319_v28 }
0x162b   :  { %2595 = vmatpush3.bf16.msra.mxu1 %v3119_v52  ;;  %2457 = vmatprep.mubr.msk.f32.mxu1 %vm2848_vm0, %v2849_v1 }
0x162c   :  { %2596 = vmatprep.subr.bf16.mxu1 %v2847_v0 }
0x162d   :  { %v1045_v30 = vpop.permute.xlu0 %1044 }
0x162e   :  { %v1047_v31 = vadd.f32 %v1045_v30, %v1037_v29 }
0x162f   :  { %2598 = vmatpush3.bf16.msra.mxu1 %v3123_v55 }
0x1630   :  { %2709 = vtanh.f32 %v1047_v31  ;;  %2605 = vmatprep.subr.bf16.mxu1 %v2847_v0 }
0x163a   :  { %v2710_v32 = vpop.eup %2709 }
0x163b   :  { %1050 = vrot.lane.b32.xlu0 %v2710_v32, %s2850_s25 }
0x16ad   :  { %v1051_v33 = vpop.permute.xlu0 %1050 }
0x16ae   :  { %v1053_v35 = vmul.f32 %v2708_v25, %v1051_v33 }
0x16b0   :  { %1055 = vrot.lane.b32.xlu0 %v1053_v35, %s2851_s5 }
0x16fd   :  { %v1388_v41 = vpop.f32.mrb[12].mxu1 }
0x16fe   :  { %v1392_v62 = vadd.f32 %v1388_v41, %v1175_v37  ;;  %v2437_v42 = vpop.f32.mrb[13].mxu1  ;;  %v1190_v41 = vadd.f32 %v3149_v8, %v3112_v40 }
0x1700   :  { %2711 = vtanh.f32 %v1392_v62  ;;  %v2170_v46 = vmul.f32 -1.442695, %v1392_v62 }
0x1702   :  { %2713 = vpow2.f32 %v2170_v46 }
0x170a   :  { %v2712_v43 = vpop.eup %2711 }
0x170b   :  { %1402 = vrot.lane.b32.xlu1 %v2712_v43, %s2850_s25 }
0x170c   :  { %v2714_v47 = vpop.eup %2713 }
0x170d   :  { %v1396_v34 = vadd.f32 1.0, %v2714_v47 }
0x170f   :  { %2715 = vrcp.f32 %v1396_v34 }
0x1719   :  { %v2716_v48 = vpop.eup %2715 }
0x171a   :  { %v1400_v51 = vmul.f32 %v2716_v48, %v1309_v17 }
0x1722   :  { %v1056_v44 = vpop.permute.xlu0 %1055 }
0x1723   :  { %1059 = vst.msk [vmem:[#allocation3 + $0x38] sm:$0xff] %vm221_vm2, %v1056_v44 }
0x172a   :  { %v1067_v45 = vld [vmem:[#allocation3 + $0x38] sm:$0xff] }
0x172b   :  { %2414 = vmatmul.mubr.msk.f32.gmra.mrb[20].mxu0 %vm221_vm2, %v1067_v45 }
0x172c   :  { %2446 = vmatprep.mubr.msk.f32.mxu0 %vm2848_vm0, %v2849_v1 }
0x177d   :  { %v1403_v49 = vpop.permute.xlu1 %1402 }
0x177e   :  { %v1405_v50 = vmul.f32 %v2716_v48, %v1403_v49 }
0x1780   :  { %1407 = vrot.lane.b32.xlu1 %v1405_v50, %s2851_s5 }
0x17f2   :  { %v1408_v53 = vpop.permute.xlu1 %1407 }
0x17f3   :  { %v1410_v54 = vadd.f32 %v1408_v53, %v1400_v51 }
0x17f5   :  { %2717 = vtanh.f32 %v1410_v54 }
0x17fe   :  { %v3176_v56 = vpop.f32.mrb[20].mxu0 }
0x17ff   :  { %v2718_v57 = vpop.eup %2717  ;;  %v3178_v58 = vpop.f32.mrb[21].mxu0 }
0x1800   :  { %1413 = vrot.lane.b32.xlu1 %v2718_v57, %s2850_s25 }
0x1872   :  { %v1414_v60 = vpop.permute.xlu1 %1413 }
0x1873   :  { %v1416_v63 = vmul.f32 %v2716_v48, %v1414_v60 }
0x1875   :  { %1419 = vrot.lane.b32.xlu1 %v1416_v63, %s2851_s5  ;;  %v1195_v63 = vadd.f32 %v3110_v39, %v3149_v8 }
0x18e7   :  { %v1420_v2 = vpop.permute.xlu1 %1419 }
0x18e8   :  { %2447 = vmatmul.mubr.msk.f32.vlgmr.msra.gmra.mrb[22].mxu0 %vm221_vm2, %v1420_v2 }
0x18e9   :  { %2601 = vmatpush3.bf16.msra.mxu0 %v3119_v52  ;;  %2468 = vmatprep.mubr.msk.f32.mxu0 %vm2848_vm0, %v2849_v1 }
0x18ea   :  { %2602 = vmatprep.subr.bf16.mxu0 %v2847_v0 }
0x18ed   :  { %2604 = vmatpush3.bf16.msra.mxu0 %v3123_v55 }
0x18ee   :  { %2611 = vmatprep.subr.bf16.mxu0 %v2847_v0 }
0x19bb   :  { %v1489_v4 = vpop.f32.mrb[22].mxu0 }
0x19bc   :  { %v1493_v5 = vadd.f32 %v1489_v4, %v1180_v3  ;;  %v2448_v6 = vpop.f32.mrb[23].mxu0 }
0x19be   :  { %2719 = vtanh.f32 %v1493_v5  ;;  %v2172_v9 = vmul.f32 -1.442695, %v1493_v5 }
0x19c0   :  { %2721 = vpow2.f32 %v2172_v9 }
0x19c8   :  { %v2720_v7 = vpop.eup %2719 }
0x19c9   :  { %1503 = vrot.lane.b32.xlu0 %v2720_v7, %s2850_s25 }
0x19ca   :  { %v2722_v12 = vpop.eup %2721 }
0x19cb   :  { %v1497_v10 = vadd.f32 1.0, %v2722_v12 }
0x19cd   :  { %2723 = vrcp.f32 %v1497_v10 }
0x19d7   :  { %v2724_v13 = vpop.eup %2723 }
0x19d8   :  { %v1501_v59 = vmul.f32 %v2724_v13, %v1410_v54 }
0x1a3b   :  { %v1504_v61 = vpop.permute.xlu0 %1503 }
0x1a3c   :  { %v1506_v11 = vmul.f32 %v2724_v13, %v1504_v61 }
0x1a3e   :  { %1508 = vrot.lane.b32.xlu1 %v1506_v11, %s2851_s5 }
0x1ab0   :  { %v1509_v14 = vpop.permute.xlu1 %1508 }
0x1ab1   :  { %v1511_v38 = vadd.f32 %v1509_v14, %v1501_v59 }
0x1ab3   :  { %2725 = vtanh.f32 %v1511_v38 }
0x1abd   :  { %v2726_v15 = vpop.eup %2725 }
0x1abe   :  { %1514 = vrot.lane.b32.xlu0 %v2726_v15, %s2850_s25 }
0x1b30   :  { %v1515_v16 = vpop.permute.xlu0 %1514 }
0x1b31   :  { %v1517_v17 = vmul.f32 %v2724_v13, %v1515_v16 }
0x1b33   :  { %1520 = vrot.lane.b32.xlu1 %v1517_v17, %s2851_s5 }
0x1ba5   :  { %v1521_v18 = vpop.permute.xlu1 %1520 }
0x1ba6   :  { %2458 = vmatmul.mubr.msk.f32.vlgmr.msra.gmra.mrb[14].mxu1 %vm221_vm2, %v1521_v18 }
0x1ba7   :  { %2607 = vmatpush3.bf16.msra.mxu1 %v3119_v52  ;;  %2479 = vmatprep.mubr.msk.f32.mxu1 %vm2848_vm0, %v2849_v1 }
0x1ba8   :  { %2608 = vmatprep.subr.bf16.mxu1 %v2847_v0 }
0x1bab   :  { %2610 = vmatpush3.bf16.msra.mxu1 %v3123_v55 }
0x1bac   :  { %2617 = vmatprep.subr.bf16.mxu1 %v2847_v0 }
0x1c79   :  { %v1590_v20 = vpop.f32.mrb[14].mxu1 }
0x1c7a   :  { %v1594_v21 = vadd.f32 %v1590_v20, %v1185_v19  ;;  %v2459_v22 = vpop.f32.mrb[15].mxu1 }
0x1c7c   :  { %2727 = vtanh.f32 %v1594_v21  ;;  %v2174_v24 = vmul.f32 -1.442695, %v1594_v21 }
0x1c7e   :  { %2729 = vpow2.f32 %v2174_v24 }
0x1c86   :  { %v2728_v23 = vpop.eup %2727 }
0x1c87   :  { %1604 = vrot.lane.b32.xlu0 %v2728_v23, %s2850_s25 }
0x1c88   :  { %v2730_v25 = vpop.eup %2729 }
0x1c89   :  { %v1598_v26 = vadd.f32 1.0, %v2730_v25 }
0x1c8b   :  { %2731 = vrcp.f32 %v1598_v26 }
0x1c95   :  { %v2732_v27 = vpop.eup %2731 }
0x1c96   :  { %v1602_v30 = vmul.f32 %v2732_v27, %v1511_v38  ;;  %v1200_v38 = vadd.f32 %v3149_v8, %v3178_v58 }
0x1cf9   :  { %v1605_v28 = vpop.permute.xlu0 %1604 }
0x1cfa   :  { %v1607_v29 = vmul.f32 %v2732_v27, %v1605_v28 }
0x1cfc   :  { %1609 = vrot.lane.b32.xlu1 %v1607_v29, %s2851_s5 }
0x1d6e   :  { %v1610_v31 = vpop.permute.xlu1 %1609 }
0x1d6f   :  { %v1612_v36 = vadd.f32 %v1610_v31, %v1602_v30  ;;  %v1205_v30 = vadd.f32 %v3176_v56, %v3149_v8  ;;  %v2023_v56 = vld [vmem:[%s3285_s7] sm:$0xff] }
0x1d71   :  { %2733 = vtanh.f32 %v1612_v36 }
0x1d7b   :  { %v2734_v32 = vpop.eup %2733 }
0x1d7c   :  { %1615 = vrot.lane.b32.xlu0 %v2734_v32, %s2850_s25 }
0x1dee   :  { %v1616_v33 = vpop.permute.xlu0 %1615 }
0x1def   :  { %v1618_v35 = vmul.f32 %v2732_v27, %v1616_v33 }
0x1df1   :  { %1621 = vrot.lane.b32.xlu1 %v1618_v35, %s2851_s5 }
0x1e63   :  { %v1622_v37 = vpop.permute.xlu1 %1621 }
0x1e64   :  { %2469 = vmatmul.mubr.msk.f32.vlgmr.msra.gmra.mrb[24].mxu0 %vm221_vm2, %v1622_v37 }
0x1e65   :  { %2613 = vmatpush3.bf16.msra.mxu0 %v3119_v52  ;;  %2490 = vmatprep.mubr.msk.f32.mxu0 %vm2848_vm0, %v2849_v1 }
0x1e66   :  { %2614 = vmatprep.subr.bf16.mxu0 %v2847_v0 }
0x1e69   :  { %2616 = vmatpush3.bf16.msra.mxu0 %v3123_v55 }
0x1e6a   :  { %2623 = vmatprep.subr.bf16.mxu0 %v2847_v0 }
0x1f37   :  { %v1691_v62 = vpop.f32.mrb[24].mxu0 }
0x1f38   :  { %v1695_v42 = vadd.f32 %v1691_v62, %v1190_v41  ;;  %v2470_v43 = vpop.f32.mrb[25].mxu0 }
0x1f3a   :  { %2735 = vtanh.f32 %v1695_v42  ;;  %v2176_v45 = vmul.f32 -1.442695, %v1695_v42 }
0x1f3c   :  { %2737 = vpow2.f32 %v2176_v45 }
0x1f44   :  { %v2736_v44 = vpop.eup %2735 }
0x1f45   :  { %1705 = vrot.lane.b32.xlu0 %v2736_v44, %s2850_s25 }
0x1f46   :  { %v2738_v46 = vpop.eup %2737 }
0x1f47   :  { %v1699_v47 = vadd.f32 1.0, %v2738_v46  ;;  %v2024_v46 = vld [vmem:[%s3285_s7 + $0x8] sm:$0xff] }
0x1f49   :  { %2739 = vrcp.f32 %v1699_v47  ;;  %v2025_v47 = vld [vmem:[%s3285_s7 + $0x10] sm:$0xff] }
0x1f53   :  { %v2740_v34 = vpop.eup %2739 }
0x1f54   :  { %v1703_v50 = vmul.f32 %v2740_v34, %v1612_v36 }
0x1fb7   :  { %v1706_v48 = vpop.permute.xlu0 %1705 }
0x1fb8   :  { %v1708_v49 = vmul.f32 %v2740_v34, %v1706_v48  ;;  %v2026_v48 = vld [vmem:[%s3285_s7 + $0x18] sm:$0xff]  ;;  %s2852_s7 = smov [#allocation9]  }
0x1fba   :  { %1710 = vrot.lane.b32.xlu1 %v1708_v49, %s2851_s5  ;;  %v2627_v49 = vpack.c.bf16 %v2026_v48, %v2025_v47 }
0x202c   :  { %v1711_v51 = vpop.permute.xlu1 %1710 }
0x202d   :  { %v1713_v40 = vadd.f32 %v1711_v51, %v1703_v50 }
0x202f   :  { %2741 = vtanh.f32 %v1713_v40 }
0x2039   :  { %v2742_v53 = vpop.eup %2741 }
0x203a   :  { %1716 = vrot.lane.b32.xlu0 %v2742_v53, %s2850_s25 }
0x20ac   :  { %v1717_v54 = vpop.permute.xlu0 %1716 }
0x20ad   :  { %v1719_v57 = vmul.f32 %v2740_v34, %v1717_v54  ;;  %v2624_v34 = vpack.c.bf16 %v2024_v46, %v2023_v56  ;;  %v2183_v54 = vld [vmem:[%s3286_s8] ss:$0 sm:$0xff] }
0x20af   :  { %1722 = vrot.lane.b32.xlu1 %v1719_v57, %s2851_s5 }
0x2121   :  { %v1723_v60 = vpop.permute.xlu1 %1722 }
0x2122   :  { %2480 = vmatmul.mubr.msk.f32.vlgmr.msra.gmra.mrb[16].mxu1 %vm221_vm2, %v1723_v60 }
0x2123   :  { %2619 = vmatpush3.bf16.msra.mxu1 %v3119_v52  ;;  %2501 = vmatprep.mubr.msk.f32.mxu1 %vm2848_vm0, %v2849_v1 }
0x2124   :  { %2620 = vmatprep.subr.bf16.mxu1 %v2847_v0 }
0x2127   :  { %2622 = vmatpush3.bf16.msra.mxu1 %v3123_v55 }
0x21f5   :  { %v1792_v2 = vpop.f32.mrb[16].mxu1 }
0x21f6   :  { %v1796_v3 = vadd.f32 %v1792_v2, %v1195_v63  ;;  %v2481_v4 = vpop.f32.mrb[17].mxu1 }
0x21f8   :  { %2743 = vtanh.f32 %v1796_v3  ;;  %v2178_v6 = vmul.f32 -1.442695, %v1796_v3 }
0x21fa   :  { %2745 = vpow2.f32 %v2178_v6 }
0x2202   :  { %v2744_v5 = vpop.eup %2743 }
0x2203   :  { %1806 = vrot.lane.b32.xlu0 %v2744_v5, %s2850_s25 }
0x2204   :  { %v2746_v52 = vpop.eup %2745 }
0x2205   :  { %v1800_v7 = vadd.f32 1.0, %v2746_v52 }
0x2207   :  { %2747 = vrcp.f32 %v1800_v7 }
0x2211   :  { %v2748_v9 = vpop.eup %2747 }
0x2212   :  { %v1804_v55 = vmul.f32 %v2748_v9, %v1713_v40 }
0x2275   :  { %v1807_v12 = vpop.permute.xlu0 %1806 }
0x2276   :  { %v1809_v10 = vmul.f32 %v2748_v9, %v1807_v12 }
0x2278   :  { %1811 = vrot.lane.b32.xlu1 %v1809_v10, %s2851_s5 }
0x22ea   :  { %v1812_v13 = vpop.permute.xlu1 %1811 }
0x22eb   :  { %v1814_v39 = vadd.f32 %v1812_v13, %v1804_v55 }
0x22ed   :  { %2749 = vtanh.f32 %v1814_v39 }
0x22f7   :  { %v2750_v61 = vpop.eup %2749 }
0x22f8   :  { %1817 = vrot.lane.b32.xlu0 %v2750_v61, %s2850_s25 }
0x236a   :  { %v1818_v11 = vpop.permute.xlu0 %1817 }
0x236b   :  { %v1820_v59 = vmul.f32 %v2748_v9, %v1818_v11 }
0x236d   :  { %1823 = vrot.lane.b32.xlu1 %v1820_v59, %s2851_s5 }
0x23df   :  { %v1824_v14 = vpop.permute.xlu1 %1823 }
0x23e0   :  { %2491 = vmatmul.mubr.msk.f32.vlgmr.msra.gmra.mrb[26].mxu0 %vm221_vm2, %v1824_v14 }
0x23e1   :  { %2512 = vmatprep.mubr.msk.f32.mxu0 %vm2848_vm0, %v2849_v1  ;;  %2625 = vmatpush3.bf16.msra.mxu0 %v2624_v34 }
0x23e2   :  { %2626 = vmatprep.subr.bf16.mxu0 %v2847_v0 }
0x23e5   :  { %2628 = vmatpush3.bf16.msra.mxu0 %v2627_v49 }
0x24b3   :  { %v1893_v15 = vpop.f32.mrb[26].mxu0 }
0x24b4   :  { %v1897_v16 = vadd.f32 %v1893_v15, %v1200_v38  ;;  %v2492_v17 = vpop.f32.mrb[27].mxu0 }
0x24b6   :  { %2751 = vtanh.f32 %v1897_v16  ;;  %v2180_v19 = vmul.f32 -1.442695, %v1897_v16 }
0x24b8   :  { %2753 = vpow2.f32 %v2180_v19 }
0x24c0   :  { %v2752_v18 = vpop.eup %2751 }
0x24c1   :  { %1907 = vrot.lane.b32.xlu0 %v2752_v18, %s2850_s25 }
0x24c2   :  { %v2754_v20 = vpop.eup %2753 }
0x24c3   :  { %v1901_v21 = vadd.f32 1.0, %v2754_v20 }
0x24c5   :  { %2755 = vrcp.f32 %v1901_v21 }
0x24cf   :  { %v2756_v22 = vpop.eup %2755 }
0x24d0   :  { %v1905_v1 = vmul.f32 %v2756_v22, %v1814_v39 }
0x2533   :  { %v1908_v23 = vpop.permute.xlu0 %1907 }
0x2534   :  { %v1910_v24 = vmul.f32 %v2756_v22, %v1908_v23 }
0x2536   :  { %1912 = vrot.lane.b32.xlu1 %v1910_v24, %s2851_s5 }
0x25a8   :  { %v1913_v25 = vpop.permute.xlu1 %1912 }
0x25a9   :  { %v1915_v58 = vadd.f32 %v1913_v25, %v1905_v1 }
0x25ab   :  { %2757 = vtanh.f32 %v1915_v58 }
0x25b5   :  { %v2758_v26 = vpop.eup %2757 }
0x25b6   :  { %1918 = vrot.lane.b32.xlu0 %v2758_v26, %s2850_s25 }
0x2628   :  { %v1919_v27 = vpop.permute.xlu0 %1918 }
0x2629   :  { %v1921_v28 = vmul.f32 %v2756_v22, %v1919_v27 }
0x262b   :  { %1924 = vrot.lane.b32.xlu1 %v1921_v28, %s2851_s5 }
0x269d   :  { %v1925_v29 = vpop.permute.xlu1 %1924 }
0x269e   :  { %2502 = vmatmul.mubr.msk.f32.vlgmr.msra.gmra.mrb[18].mxu1 %vm221_vm2, %v1925_v29 }
0x2771   :  { %v1994_v31 = vpop.f32.mrb[18].mxu1 }
0x2772   :  { %v1998_v36 = vadd.f32 %v1994_v31, %v1205_v30  ;;  %v2503_v32 = vpop.f32.mrb[19].mxu1 }
0x2774   :  { %2759 = vtanh.f32 %v1998_v36  ;;  %v2182_v35 = vmul.f32 -1.442695, %v1998_v36 }
0x2776   :  { %2761 = vpow2.f32 %v2182_v35 }
0x277e   :  { %v2760_v33 = vpop.eup %2759 }
0x277f   :  { %2008 = vrot.lane.b32.xlu0 %v2760_v33, %s2850_s25 }
0x2780   :  { %v2762_v37 = vpop.eup %2761 }
0x2781   :  { %v2002_v41 = vadd.f32 1.0, %v2762_v37 }
0x2783   :  { %2763 = vrcp.f32 %v2002_v41 }
0x278d   :  { %v2764_v62 = vpop.eup %2763 }
0x278e   :  { %v2006_v44 = vmul.f32 %v2764_v62, %v1915_v58 }
0x27f1   :  { %v2009_v42 = vpop.permute.xlu0 %2008 }
0x27f2   :  { %v2011_v43 = vmul.f32 %v2764_v62, %v2009_v42 }
0x27f4   :  { %2013 = vrot.lane.b32.xlu1 %v2011_v43, %s2851_s5 }
0x2866   :  { %v2014_v45 = vpop.permute.xlu1 %2013 }
0x2867   :  { %v2016_v8 = vadd.f32 %v2014_v45, %v2006_v44 }
0x2869   :  { %2765 = vtanh.f32 %v2016_v8 }
0x2873   :  { %v2766_v50 = vpop.eup %2765 }
0x2874   :  { %2019 = vrot.lane.b32.xlu0 %v2766_v50, %s2850_s25  ;;  %s2125_s25 = sshll.u32 %s2852_s7, 4  ;;  %s2126_s25 = int_to_ptr.vmem [resolvable:$true] %s2125_s25 }
0x2875   :  { %p2820_p3 = scmp.lt.s32.totalorder %s2126_s25, %s2126_s25 }
0x28e6   :  { %v2020_v51 = vpop.permute.xlu0 %2019 }
0x28e7   :  { %v2022_v40 = vmul.f32 %v2764_v62, %v2020_v51 }
0x28e9   :  { %2035 = vrot.lane.b32.xlu1 %v2022_v40, %s2851_s5  ;;  %s2815_s5 = scalar_lea.vmem %s2126_s25, 128 }
0x28ea   :  { %p2816_p2 = scmp.ne.s32.totalorder %s2126_s25, %s2815_s5  ;;  %p2821_p4 = scmp.lt.s32.totalorder %s2815_s5, %s2815_s5 }
0x28ec   :  { %p2822_p5 = por %p2821_p4, %p2820_p3 }
0x28ee   :  { %p2823_p6 = pnand %p2822_p5, %p2816_p2 }
0x295b   :  { %v2036_v53 = vpop.permute.xlu1 %2035 }
0x295c   :  { %2513 = vmatmul.mubr.msk.f32.vlgmr.msra.gmra.mrb[28].mxu0 %vm221_vm2, %v2036_v53 }
0x2a2f   :  { %v2105_v57 = vpop.f32.mrb[28].mxu0 }
0x2a30   :  { %v2106_v60 = vadd.f32 %v2183_v54, %v2105_v57  ;;  %v2514_v63 = vpop.f32.mrb[29].mxu0 }
0x2a32   :  { %2109 = vmax.xlane.f32.xlu0 %v2106_v60 }
0x2abf   :  { %v2110_v0 = vpop.xlane.xlu0 %2109 }
0x2ac0   :  { %v2111_v2 = vsub.f32 %v2106_v60, %v2110_v0 }
0x2ac2   :  { %v2112_v3 = vmul.f32 1.442695, %v2111_v2 }
0x2ac4   :  { %2767 = vpow2.f32 %v2112_v3 }
0x2ace   :  { %v2768_v4 = vpop.eup %2767 }
0x2acf   :  { %2114 = vadd.xlane.f32.xlu1 %v2768_v4 }
0x2b5c   :  { %v2115_v5 = vpop.xlane.xlu1 %2114 }
0x2b5d   :  { %2769 = vrcp.f32 %v2115_v5 }
0x2b67   :  { %v2770_v6 = vpop.eup %2769 }
0x2b68   :  { %v2117_v52 = vmul.f32 %v2770_v6, %v2768_v4 }
0x2b6a   :  { %2118 = vst [vmem:[#allocation9] sm:$0xff] %v2117_v52 }
0x2b6b   :  { %2826 = shalt.err (!%p2823_p6)
}
0x2b6c   :  { %s2827_s1 = scalar_lea.hbm %s3287_s9, 128 }
0x2b6d   :  { %p2828_p7 = scmp.ne.s32.totalorder %s3287_s9, %s2827_s1  ;;  %p2831_p8 = scmp.lt.u32.totalorder %s2827_s1, %s3287_s9 }
0x2b6f   :  { %p2833_p9 = pnand %p2831_p8, %p2828_p7 }
0x2b71   :  { %2836 = shalt.err (!%p2833_p9)
}
0x2b72   :  { %2128 = dma.vmem_to_hbm [thread:$0]  %s2126_s25, 128, %s3287_s9, [#allocation6]  }
0x2b73   :  { %2841 = dma.done.wait [#allocation6], 128  }
0x2b74   :  { %2842 = vsyncadd [#allocation6], 4294967168 }
0x2b75   :  { %2132 = vsyncpa [#allocation5], 1 }
0x2b76   :  { %2133 = vsyncpa [#allocation8], 1 }
0x2b77   :  { %2134 = vsyncpa [#allocation6], 1 }

</bundles_post_ra>
